<compile_context>
chip_gen: v5e
topology: v5e:2x2
jax: 0.10.0
libtpu: 0.0.40
codegen_flags: <defaults>
</compile_context>

<pallas_src>
import functools
import math

import jax
import jax.numpy as jnp
from jax.experimental import pallas as pl
from jax.experimental.pallas import tpu as pltpu

LANE = 128
SUBLANE = 8


def _round_up(x, m):
    return ((x + m - 1) // m) * m


def _vmem_limit(footprint_bytes):
    # footprint * 1.5 + 4 MiB slack, clamped to [16, 48] MiB (fits v7x physical VMEM).
    return int(min(48 << 20, max(16 << 20, int(footprint_bytes * 1.5) + (4 << 20))))


def _pick_time_chunk(T, max_chunk=128):
    """Largest divisor of T not exceeding max_chunk (chunks must tile T exactly)."""
    if T <= max_chunk:
        return T
    for tc in range(max_chunk, 0, -1):
        if T % tc == 0:
            return tc
    return T


# ----------------------- row-tiled matmul + bias (proj / FC) -----------------------
def matmul_bias_kernel(x_ref, w_ref, b_ref, o_ref):
    o_ref[...] = (jnp.dot(x_ref[...], w_ref[...], preferred_element_type=jnp.float32)
                  + b_ref[...]).astype(o_ref.dtype)


def run_matmul_bias(x, w, b, out_dtype, *, row_block=512):
    """x: (N, K) bf16, w: (K, Nout) bf16, b: (1, Nout) f32 -> (N, Nout) out_dtype."""
    N, K = x.shape
    Nout = w.shape[1]
    rb = min(row_block, N)
    out_bytes = jnp.dtype(out_dtype).itemsize

    footprint = (2 * (rb * K * x.dtype.itemsize + rb * Nout * out_bytes)   # dbl-buffered
                 + K * Nout * w.dtype.itemsize + Nout * b.dtype.itemsize)
    cost = pl.CostEstimate(
        flops=2 * N * K * Nout,
        transcendentals=0,
        bytes_accessed=(N * K * x.dtype.itemsize + K * Nout * w.dtype.itemsize
                        + Nout * b.dtype.itemsize + N * Nout * out_bytes))

    grid_spec = pltpu.PrefetchScalarGridSpec(
        num_scalar_prefetch=0,
        grid=(pl.cdiv(N, rb),),
        in_specs=[
            pl.BlockSpec((rb, K), lambda i: (i, 0)),
            pl.BlockSpec((K, Nout), lambda i: (0, 0)),     # resident across row tiles
            pl.BlockSpec((1, Nout), lambda i: (0, 0)),
        ],
        out_specs=pl.BlockSpec((rb, Nout), lambda i: (i, 0)),
    )
    return pl.pallas_call(
        matmul_bias_kernel,
        out_shape=jax.ShapeDtypeStruct((N, Nout), out_dtype),
        grid_spec=grid_spec,
        compiler_params=pltpu.CompilerParams(
            dimension_semantics=("parallel",),             # row tiles -> 2 TCs on v7x
            vmem_limit_bytes=_vmem_limit(footprint)),
        cost_estimate=cost,
    )(x, w, b)


# --------------------------------- LSTM recurrence ---------------------------------
def lstm_recurrence_kernel(xp_ref, h0_ref, c0_ref, whh_ref, y_ref, hT_ref, cT_ref,
                           *, hidden_pad, unroll):
    """One time-chunk of one batch shard.

    xp_ref : (tc, bb, 4*H) bf16   precomputed x @ W_ih + bias (fused gates, lane-dense)
    whh_ref: (H, 4*H)       bf16   fused recurrent weights, resident across chunks
    y_ref  : (tc, bb, H)    bf16   hidden states (time-major)
    hT/cT  : (bb, H)        f32    state carry (resident output blocks across t-chunks)
    """
    tc = xp_ref.shape[0]
    H = hidden_pad

    @pl.when(pl.program_id(1) == 0)
    def _():
        hT_ref[...] = h0_ref[...]
        cT_ref[...] = c0_ref[...]

    w = whh_ref[...]                                        # stays resident in vregs/VMEM

    def step(t, carry):
        h, c = carry                                        # f32 (bb, H)
        # Single full-lane-width MXU matmul on the serial critical path.
        pre = (xp_ref[t].astype(jnp.float32)
               + jnp.dot(h.astype(w.dtype), w, preferred_element_type=jnp.float32))
        i_g = jax.nn.sigmoid(pre[:, 0 * H:1 * H])           # lane-aligned gate slices
        f_g = jax.nn.sigmoid(pre[:, 1 * H:2 * H])
        g_g = jnp.tanh(pre[:, 2 * H:3 * H])
        o_g = jax.nn.sigmoid(pre[:, 3 * H:4 * H])
        c_new = f_g * c + i_g * g_g                         # elementwise kept f32
        h_new = o_g * jnp.tanh(c_new)
        y_ref[t] = h_new.astype(y_ref.dtype)
        return h_new, c_new

    h, c = jax.lax.fori_loop(0, tc, step, (hT_ref[...], cT_ref[...]), unroll=unroll)
    hT_ref[...] = h
    cT_ref[...] = c


def run_lstm_recurrence(xp, h0, c0, w_hh, *, batch_block=None, time_chunk=None):
    """xp: (T, B, 4*H) bf16. Returns y (T, B, H) bf16, h_T (B, H) f32, c_T (B, H) f32."""
    T, B, GH = xp.shape
    H = GH // 4

    bb = B if batch_block is None else batch_block
    assert B % bb == 0 and bb % SUBLANE == 0
    nb = B // bb
    tc = _pick_time_chunk(T) if time_chunk is None else time_chunk
    assert T % tc == 0
    nt = T // tc
    unroll = True if tc <= 16 else 4

    footprint = (2 * (tc * bb * GH * 2 + tc * bb * H * 2)   # xp / y blocks, dbl-buffered
                 + H * GH * 2                               # fused W_hh (bf16)
                 + 4 * bb * H * 4)                          # h0/c0/hT/cT (f32)

    kernel = functools.partial(lstm_recurrence_kernel, hidden_pad=H, unroll=unroll)

    grid_spec = pltpu.PrefetchScalarGridSpec(
        num_scalar_prefetch=0,
        grid=(nb, nt),                                      # t-chunks innermost
        in_specs=[
            pl.BlockSpec((tc, bb, GH), lambda n, t: (t, n, 0)),   # xp (streamed)
            pl.BlockSpec((bb, H), lambda n, t: (n, 0)),           # h0 (resident)
            pl.BlockSpec((bb, H), lambda n, t: (n, 0)),           # c0 (resident)
            pl.BlockSpec((H, GH), lambda n, t: (0, 0)),           # W_hh (resident)
        ],
        out_specs=[
            pl.BlockSpec((tc, bb, H), lambda n, t: (t, n, 0)),    # y (streamed)
            pl.BlockSpec((bb, H), lambda n, t: (n, 0)),           # h carry / h_T
            pl.BlockSpec((bb, H), lambda n, t: (n, 0)),           # c carry / c_T
        ],
    )
    return pl.pallas_call(
        kernel,
        out_shape=(jax.ShapeDtypeStruct((T, B, H), jnp.bfloat16),
                   jax.ShapeDtypeStruct((B, H), jnp.float32),
                   jax.ShapeDtypeStruct((B, H), jnp.float32)),
        grid_spec=grid_spec,
        compiler_params=pltpu.CompilerParams(
            dimension_semantics=("parallel", "arbitrary"),  # batch shards || , time seq
            vmem_limit_bytes=_vmem_limit(footprint)),
    )(xp, h0, c0, w_hh)


# ---------------------------------- parameter init ----------------------------------
def init_params(key, vocab_size, output_size, embedding_dim, hidden_dim, n_layers):
    """PyTorch-style init (U(-1/sqrt(H), 1/sqrt(H)) weights, b_ih+b_hh folded,
    N(0,1) embedding), stored in fused, zero-padded, lane-dense layouts."""
    scale = 1.0 / math.sqrt(hidden_dim)
    E_pad = _round_up(embedding_dim, LANE)
    H_pad = _round_up(hidden_dim, LANE)
    O_pad = _round_up(output_size, LANE)

    n_keys = 1 + 4 * n_layers + 2
    keys = jax.random.split(key, n_keys)
    ki = iter(range(n_keys))

    emb = jax.random.normal(keys[next(ki)], (vocab_size, embedding_dim), jnp.float32)
    params = {"embedding": jnp.pad(emb, ((0, 0), (0, E_pad - embedding_dim)))}

    def fuse_pad(w_g, in_dim, in_pad):
        # w_g: (4, in_dim, H) gate order (i, f, g, o) -> fused zero-padded (in_pad, 4*H_pad)
        out = jnp.zeros((in_pad, 4 * H_pad), jnp.float32)
        for g in range(4):
            out = out.at[:in_dim, g * H_pad:g * H_pad + hidden_dim].set(w_g[g])
        return out

    layers = []
    for l in range(n_layers):
        in_dim = embedding_dim if l == 0 else hidden_dim
        in_pad = E_pad if l == 0 else H_pad
        w_ih = jax.random.uniform(keys[next(ki)], (4, in_dim, hidden_dim),
                                  jnp.float32, -scale, scale)
        w_hh = jax.random.uniform(keys[next(ki)], (4, hidden_dim, hidden_dim),
                                  jnp.float32, -scale, scale)
        b_ih = jax.random.uniform(keys[next(ki)], (4, hidden_dim),
                                  jnp.float32, -scale, scale)
        b_hh = jax.random.uniform(keys[next(ki)], (4, hidden_dim),
                                  jnp.float32, -scale, scale)
        bias = jnp.zeros((1, 4 * H_pad), jnp.float32)
        for g in range(4):
            bias = bias.at[0, g * H_pad:g * H_pad + hidden_dim].set(b_ih[g] + b_hh[g])
        layers.append({
            "w_ih": fuse_pad(w_ih, in_dim, in_pad).astype(jnp.bfloat16),
            "w_hh": fuse_pad(w_hh, hidden_dim, H_pad).astype(jnp.bfloat16),
            "bias": bias,                                   # f32, matches b_ih + b_hh
        })
    params["lstm"] = layers

    fc_w = jax.random.uniform(keys[next(ki)], (hidden_dim, output_size),
                              jnp.float32, -scale, scale)
    fc_b = jax.random.uniform(keys[next(ki)], (1, output_size),
                              jnp.float32, -scale, scale)
    params["fc_w"] = jnp.pad(
        fc_w, ((0, H_pad - hidden_dim), (0, O_pad - output_size))).astype(jnp.bfloat16)
    params["fc_b"] = jnp.pad(fc_b, ((0, 0), (0, O_pad - output_size)))
    return params


# ------------------------------------ forward ---------------------------------------
@functools.partial(jax.jit, static_argnames=("hidden_dim", "output_size"))
def sentiment_lstm_forward(params, text, hidden, *, hidden_dim, output_size):
    """
    text:   (B, T) int32 token ids
    hidden: (h0, c0), each (n_layers, B, H)
    returns (dense_outputs (B*T, O), (h_n, c_n)) -- same semantics as the torch module
    """
    h0_all, c0_all = hidden
    B, T = text.shape
    L = h0_all.shape[0]
    H_pad = params["lstm"][0]["w_hh"].shape[0]
    O_pad = params["fc_w"].shape[1]

    B_pad = _round_up(max(B, SUBLANE), SUBLANE)

    # Token gather directly in time-major row order (t*B_pad + b); only the tiny id
    # array is transposed/padded, never the (T, B, E/H) activations.
    text_pad = jnp.pad(text, ((0, B_pad - B), (0, 0)))
    tok_tm = text_pad.T.reshape(-1)                                       # (T*B_pad,)
    x_flat = jnp.take(params["embedding"], tok_tm, axis=0).astype(jnp.bfloat16)

    h0_pad = jnp.zeros((L, B_pad, H_pad), jnp.float32).at[:, :B, :hidden_dim].set(h0_all)
    c0_pad = jnp.zeros((L, B_pad, H_pad), jnp.float32).at[:, :B, :hidden_dim].set(c0_all)

    # Shard the recurrence over batch only when each shard stays sublane-aligned.
    bb = B_pad // 2 if (B_pad >= 16 and (B_pad // 2) % SUBLANE == 0) else B_pad

    h_finals, c_finals = [], []
    for l, layer in enumerate(params["lstm"]):
        # Hoisted input projection: one fused (T*B_pad, 4*H_pad) matmul, bf16 output.
        xp = run_matmul_bias(x_flat, layer["w_ih"], layer["bias"], jnp.bfloat16)
        xp = xp.reshape(T, B_pad, 4 * H_pad)                               # free reshape
        y, h_T, c_T = run_lstm_recurrence(xp, h0_pad[l], c0_pad[l], layer["w_hh"],
                                          batch_block=bb)
        h_finals.append(h_T[:B, :hidden_dim])
        c_finals.append(c_T[:B, :hidden_dim])
        # TODO(synk): nn.LSTM inter-layer dropout is train-only/stochastic; omitted.
        x_flat = y.reshape(T * B_pad, H_pad)                               # bf16

    # FC on time-major rows with lane-padded output; reorder tiny logits to batch-first
    # (matches lstm_out.view(-1, H) -> fc) and slice off all padding.
    logits_tm = run_matmul_bias(x_flat, params["fc_w"], params["fc_b"], jnp.float32)
    dense_outputs = (logits_tm.reshape(T, B_pad, O_pad)
                     .transpose(1, 0, 2)[:B, :, :output_size]
                     .reshape(B * T, output_size))

    h_n = jnp.stack(h_finals, axis=0)                                      # (L, B, H)
    c_n = jnp.stack(c_finals, axis=0)
    return dense_outputs, (h_n, c_n)


if __name__ == "__main__":
    vocab_size = 50
    output_size = 2
    embedding_dim = 32
    hidden_dim = 32
    n_layers = 2
    batch = 2
    seq = 8

    key = jax.random.PRNGKey(0)
    k_params, k_text = jax.random.split(key)

    params = init_params(k_params, vocab_size, output_size,
                         embedding_dim, hidden_dim, n_layers)

    text = jax.random.randint(k_text, (batch, seq), 0, vocab_size, dtype=jnp.int32)

    # init_hidden: zeros for h0 and c0
    h0 = jnp.zeros((n_layers, batch, hidden_dim), jnp.float32)
    c0 = jnp.zeros((n_layers, batch, hidden_dim), jnp.float32)

    dense_outputs, (h_n, c_n) = sentiment_lstm_forward(
        params, text, (h0, c0), hidden_dim=hidden_dim, output_size=output_size)
    jax.block_until_ready((dense_outputs, h_n, c_n))

    assert dense_outputs.shape == (batch * seq, output_size)
    assert h_n.shape == (n_layers, batch, hidden_dim)
    assert c_n.shape == (n_layers, batch, hidden_dim)
    assert bool(jnp.all(jnp.isfinite(dense_outputs)))
    print("KERNEL_OK")
</pallas_src>

<mosaic_0001>
module attributes {stable_mosaic.version = 11 : i64} {
  func.func @matmul_bias_kernel(%arg0: i32, %arg1: memref<64x128xbf16, #tpu.memory_space<vmem>>, %arg2: memref<128x512xbf16, #tpu.memory_space<vmem>>, %arg3: memref<1x512xf32, #tpu.memory_space<vmem>>, %arg4: memref<64x512xbf16, #tpu.memory_space<vmem>>) attributes {dimension_semantics = [#tpu.dimension_semantics<parallel>], iteration_bounds = array<i64: 1>, scalar_prefetch = 0 : i64, scratch_operands = 0 : i64, tpu.core_type = #tpu.core_type<tc>, window_params = [{transform_indices = @transform_0, window_bounds = array<i64: 64, 128>}, {pipeline_mode = #tpu.pipeline_mode<synchronous>, transform_indices = @transform_1, window_bounds = array<i64: 128, 512>}, {pipeline_mode = #tpu.pipeline_mode<synchronous>, transform_indices = @transform_2, window_bounds = array<i64: 1, 512>}, {transform_indices = @transform_3, window_bounds = array<i64: 64, 512>}]} {
    %c0 = arith.constant 0 : index
    %c0_0 = arith.constant 0 : index
    %0 = vector.load %arg1[%c0, %c0_0] : memref<64x128xbf16, #tpu.memory_space<vmem>>, vector<64x128xbf16>
    %c0_1 = arith.constant 0 : index
    %c0_2 = arith.constant 0 : index
    %1 = vector.load %arg2[%c0_1, %c0_2] : memref<128x512xbf16, #tpu.memory_space<vmem>>, vector<128x512xbf16>
    %cst = arith.constant dense<0.000000e+00> : vector<64x512xf32>
    %2 = tpu.matmul %0, %1, %cst {dimension_numbers = #tpu.dot_dimension_numbers<[1], [0], [0], [1], [0, 0, 1, 1], [], []>} : vector<64x128xbf16>, vector<128x512xbf16>, vector<64x512xf32> -> vector<64x512xf32>
    %c0_3 = arith.constant 0 : index
    %c0_4 = arith.constant 0 : index
    %3 = vector.load %arg3[%c0_3, %c0_4] : memref<1x512xf32, #tpu.memory_space<vmem>>, vector<1x512xf32>
    %4 = vector.broadcast %3 : vector<1x512xf32> to vector<64x512xf32>
    %5 = arith.addf %2, %4 : vector<64x512xf32>
    %6 = arith.truncf %5 : vector<64x512xf32> to vector<64x512xbf16>
    %c0_5 = arith.constant 0 : index
    %c0_6 = arith.constant 0 : index
    %7 = vector.load %arg4[%c0_5, %c0_6] : memref<64x512xbf16, #tpu.memory_space<vmem>>, vector<64x512xbf16>
    tpu.vector_store %arg4[%c0_5, %c0_6], %6 {strides = array<i32>} : memref<64x512xbf16, #tpu.memory_space<vmem>>, vector<64x512xbf16>,
    return
  }
  func.func @transform_0(%arg0: i32) -> (i32, i32) {
    %c0_i32 = arith.constant 0 : i32
    %c0_i32_0 = arith.constant 0 : i32
    return %arg0, %c0_i32 : i32, i32
  }
  func.func @transform_1(%arg0: i32) -> (i32, i32) {
    %c0_i32 = arith.constant 0 : i32
    %c0_i32_0 = arith.constant 0 : i32
    %c0_i32_1 = arith.constant 0 : i32
    return %c0_i32, %c0_i32_0 : i32, i32
  }
  func.func @transform_2(%arg0: i32) -> (i32, i32) {
    %c0_i32 = arith.constant 0 : i32
    %c0_i32_0 = arith.constant 0 : i32
    %c0_i32_1 = arith.constant 0 : i32
    return %c0_i32, %c0_i32_0 : i32, i32
  }
  func.func @transform_3(%arg0: i32) -> (i32, i32) {
    %c0_i32 = arith.constant 0 : i32
    %c0_i32_0 = arith.constant 0 : i32
    return %arg0, %c0_i32 : i32, i32
  }
}

module attributes {stable_mosaic.version = 11 : i64} {
  func.func @lstm_recurrence_kernel(%arg0: i32, %arg1: i32, %arg2: memref<8x8x512xbf16, #tpu.memory_space<vmem>>, %arg3: memref<8x128xf32, #tpu.memory_space<vmem>>, %arg4: memref<8x128xf32, #tpu.memory_space<vmem>>, %arg5: memref<128x512xbf16, #tpu.memory_space<vmem>>, %arg6: memref<8x8x128xbf16, #tpu.memory_space<vmem>>, %arg7: memref<8x128xf32, #tpu.memory_space<vmem>>, %arg8: memref<8x128xf32, #tpu.memory_space<vmem>>) attributes {dimension_semantics = [#tpu.dimension_semantics<parallel>, #tpu.dimension_semantics<arbitrary>], iteration_bounds = array<i64: 1, 1>, scalar_prefetch = 0 : i64, scratch_operands = 0 : i64, tpu.core_type = #tpu.core_type<tc>, window_params = [{transform_indices = @transform_0, window_bounds = array<i64: 8, 8, 512>}, {transform_indices = @transform_1, window_bounds = array<i64: 8, 128>}, {transform_indices = @transform_2, window_bounds = array<i64: 8, 128>}, {pipeline_mode = #tpu.pipeline_mode<synchronous>, transform_indices = @transform_3, window_bounds = array<i64: 128, 512>}, {transform_indices = @transform_4, window_bounds = array<i64: 8, 8, 128>}, {transform_indices = @transform_5, window_bounds = array<i64: 8, 128>}, {transform_indices = @transform_6, window_bounds = array<i64: 8, 128>}]} {
    %c0_i32 = arith.constant 0 : i32
    %0 = arith.cmpi eq, %arg1, %c0_i32 : i32
    %1 = arith.extui %0 : i1 to i32
    %c0_i32_0 = arith.constant 0 : i32
    %2 = arith.cmpi ne, %1, %c0_i32_0 : i32
    scf.if %2 {
      %c0_74 = arith.constant 0 : index
      %c0_75 = arith.constant 0 : index
      %304 = vector.load %arg3[%c0_74, %c0_75] : memref<8x128xf32, #tpu.memory_space<vmem>>, vector<8x128xf32>
      %c0_76 = arith.constant 0 : index
      %c0_77 = arith.constant 0 : index
      %305 = vector.load %arg7[%c0_76, %c0_77] : memref<8x128xf32, #tpu.memory_space<vmem>>, vector<8x128xf32>
      tpu.vector_store %arg7[%c0_76, %c0_77], %304 {strides = array<i32>} : memref<8x128xf32, #tpu.memory_space<vmem>>, vector<8x128xf32>,
      %c0_78 = arith.constant 0 : index
      %c0_79 = arith.constant 0 : index
      %306 = vector.load %arg4[%c0_78, %c0_79] : memref<8x128xf32, #tpu.memory_space<vmem>>, vector<8x128xf32>
      %c0_80 = arith.constant 0 : index
      %c0_81 = arith.constant 0 : index
      %307 = vector.load %arg8[%c0_80, %c0_81] : memref<8x128xf32, #tpu.memory_space<vmem>>, vector<8x128xf32>
      tpu.vector_store %arg8[%c0_80, %c0_81], %306 {strides = array<i32>} : memref<8x128xf32, #tpu.memory_space<vmem>>, vector<8x128xf32>,
    } else {
    }
    %c0 = arith.constant 0 : index
    %c0_1 = arith.constant 0 : index
    %3 = vector.load %arg5[%c0, %c0_1] : memref<128x512xbf16, #tpu.memory_space<vmem>>, vector<128x512xbf16>
    %c0_2 = arith.constant 0 : index
    %c0_3 = arith.constant 0 : index
    %4 = vector.load %arg7[%c0_2, %c0_3] : memref<8x128xf32, #tpu.memory_space<vmem>>, vector<8x128xf32>
    %c0_4 = arith.constant 0 : index
    %c0_5 = arith.constant 0 : index
    %5 = vector.load %arg8[%c0_4, %c0_5] : memref<8x128xf32, #tpu.memory_space<vmem>>, vector<8x128xf32>
    %c0_i32_6 = arith.constant 0 : i32
    %6 = arith.index_cast %c0_i32_6 : i32 to index
    %c0_7 = arith.constant 0 : index
    %c0_8 = arith.constant 0 : index
    %7 = vector.load %arg2[%6, %c0_7, %c0_8] : memref<8x8x512xbf16, #tpu.memory_space<vmem>>, vector<1x8x512xbf16>
    %8 = vector.shape_cast %7 : vector<1x8x512xbf16> to vector<8x512xbf16>
    %9 = arith.extf %8 : vector<8x512xbf16> to vector<8x512xf32>
    %10 = arith.truncf %4 : vector<8x128xf32> to vector<8x128xbf16>
    %cst = arith.constant dense<0.000000e+00> : vector<8x512xf32>
    %11 = tpu.matmul %10, %3, %cst {dimension_numbers = #tpu.dot_dimension_numbers<[1], [0], [0], [1], [0, 0, 1, 1], [], []>} : vector<8x128xbf16>, vector<128x512xbf16>, vector<8x512xf32> -> vector<8x512xf32>
    %12 = arith.addf %9, %11 : vector<8x512xf32>
    %13 = vector.extract_strided_slice %12 {offsets = [0, 0], sizes = [8, 128], strides = [1, 1]} : vector<8x512xf32> to vector<8x128xf32>
    %14 = arith.negf %13 : vector<8x128xf32>
    %15 = math.exp %14 : vector<8x128xf32>
    %cst_9 = arith.constant 1.000000e+00 : f32
    %16 = vector.broadcast %cst_9 : f32 to vector<8x128xf32>
    %17 = arith.addf %16, %15 : vector<8x128xf32>
    %18 = arith.divf %16, %17 : vector<8x128xf32>
    %19 = vector.extract_strided_slice %12 {offsets = [0, 128], sizes = [8, 128], strides = [1, 1]} : vector<8x512xf32> to vector<8x128xf32>
    %20 = arith.negf %19 : vector<8x128xf32>
    %21 = math.exp %20 : vector<8x128xf32>
    %cst_10 = arith.constant 1.000000e+00 : f32
    %22 = vector.broadcast %cst_10 : f32 to vector<8x128xf32>
    %23 = arith.addf %22, %21 : vector<8x128xf32>
    %24 = arith.divf %22, %23 : vector<8x128xf32>
    %25 = vector.extract_strided_slice %12 {offsets = [0, 256], sizes = [8, 128], strides = [1, 1]} : vector<8x512xf32> to vector<8x128xf32>
    %26 = math.tanh %25 : vector<8x128xf32>
    %27 = vector.extract_strided_slice %12 {offsets = [0, 384], sizes = [8, 128], strides = [1, 1]} : vector<8x512xf32> to vector<8x128xf32>
    %28 = arith.negf %27 : vector<8x128xf32>
    %29 = math.exp %28 : vector<8x128xf32>
    %cst_11 = arith.constant 1.000000e+00 : f32
    %30 = vector.broadcast %cst_11 : f32 to vector<8x128xf32>
    %31 = arith.addf %30, %29 : vector<8x128xf32>
    %32 = arith.divf %30, %31 : vector<8x128xf32>
    %33 = arith.mulf %24, %5 : vector<8x128xf32>
    %34 = arith.mulf %18, %26 : vector<8x128xf32>
    %35 = arith.addf %33, %34 : vector<8x128xf32>
    %36 = math.tanh %35 : vector<8x128xf32>
    %37 = arith.mulf %32, %36 : vector<8x128xf32>
    %38 = arith.truncf %37 : vector<8x128xf32> to vector<8x128xbf16>
    %39 = arith.index_cast %c0_i32_6 : i32 to index
    %c0_12 = arith.constant 0 : index
    %c0_13 = arith.constant 0 : index
    %40 = vector.load %arg6[%39, %c0_12, %c0_13] : memref<8x8x128xbf16, #tpu.memory_space<vmem>>, vector<1x8x128xbf16>
    %41 = vector.shape_cast %40 : vector<1x8x128xbf16> to vector<8x128xbf16>
    %42 = vector.shape_cast %38 : vector<8x128xbf16> to vector<1x8x128xbf16>
    tpu.vector_store %arg6[%39, %c0_12, %c0_13], %42 {strides = array<i32>} : memref<8x8x128xbf16, #tpu.memory_space<vmem>>, vector<1x8x128xbf16>,
    %c1_i32 = arith.constant 1 : i32
    %43 = arith.index_cast %c1_i32 : i32 to index
    %c0_14 = arith.constant 0 : index
    %c0_15 = arith.constant 0 : index
    %44 = vector.load %arg2[%43, %c0_14, %c0_15] : memref<8x8x512xbf16, #tpu.memory_space<vmem>>, vector<1x8x512xbf16>
    %45 = vector.shape_cast %44 : vector<1x8x512xbf16> to vector<8x512xbf16>
    %46 = arith.extf %45 : vector<8x512xbf16> to vector<8x512xf32>
    %47 = arith.truncf %37 : vector<8x128xf32> to vector<8x128xbf16>
    %cst_16 = arith.constant dense<0.000000e+00> : vector<8x512xf32>
    %48 = tpu.matmul %47, %3, %cst_16 {dimension_numbers = #tpu.dot_dimension_numbers<[1], [0], [0], [1], [0, 0, 1, 1], [], []>} : vector<8x128xbf16>, vector<128x512xbf16>, vector<8x512xf32> -> vector<8x512xf32>
    %49 = arith.addf %46, %48 : vector<8x512xf32>
    %50 = vector.extract_strided_slice %49 {offsets = [0, 0], sizes = [8, 128], strides = [1, 1]} : vector<8x512xf32> to vector<8x128xf32>
    %51 = arith.negf %50 : vector<8x128xf32>
    %52 = math.exp %51 : vector<8x128xf32>
    %cst_17 = arith.constant 1.000000e+00 : f32
    %53 = vector.broadcast %cst_17 : f32 to vector<8x128xf32>
    %54 = arith.addf %53, %52 : vector<8x128xf32>
    %55 = arith.divf %53, %54 : vector<8x128xf32>
    %56 = vector.extract_strided_slice %49 {offsets = [0, 128], sizes = [8, 128], strides = [1, 1]} : vector<8x512xf32> to vector<8x128xf32>
    %57 = arith.negf %56 : vector<8x128xf32>
    %58 = math.exp %57 : vector<8x128xf32>
    %cst_18 = arith.constant 1.000000e+00 : f32
    %59 = vector.broadcast %cst_18 : f32 to vector<8x128xf32>
    %60 = arith.addf %59, %58 : vector<8x128xf32>
    %61 = arith.divf %59, %60 : vector<8x128xf32>
    %62 = vector.extract_strided_slice %49 {offsets = [0, 256], sizes = [8, 128], strides = [1, 1]} : vector<8x512xf32> to vector<8x128xf32>
    %63 = math.tanh %62 : vector<8x128xf32>
    %64 = vector.extract_strided_slice %49 {offsets = [0, 384], sizes = [8, 128], strides = [1, 1]} : vector<8x512xf32> to vector<8x128xf32>
    %65 = arith.negf %64 : vector<8x128xf32>
    %66 = math.exp %65 : vector<8x128xf32>
    %cst_19 = arith.constant 1.000000e+00 : f32
    %67 = vector.broadcast %cst_19 : f32 to vector<8x128xf32>
    %68 = arith.addf %67, %66 : vector<8x128xf32>
    %69 = arith.divf %67, %68 : vector<8x128xf32>
    %70 = arith.mulf %61, %35 : vector<8x128xf32>
    %71 = arith.mulf %55, %63 : vector<8x128xf32>
    %72 = arith.addf %70, %71 : vector<8x128xf32>
    %73 = math.tanh %72 : vector<8x128xf32>
    %74 = arith.mulf %69, %73 : vector<8x128xf32>
    %75 = arith.truncf %74 : vector<8x128xf32> to vector<8x128xbf16>
    %76 = arith.index_cast %c1_i32 : i32 to index
    %c0_20 = arith.constant 0 : index
    %c0_21 = arith.constant 0 : index
    %77 = vector.load %arg6[%76, %c0_20, %c0_21] : memref<8x8x128xbf16, #tpu.memory_space<vmem>>, vector<1x8x128xbf16>
    %78 = vector.shape_cast %77 : vector<1x8x128xbf16> to vector<8x128xbf16>
    %79 = vector.shape_cast %75 : vector<8x128xbf16> to vector<1x8x128xbf16>
    tpu.vector_store %arg6[%76, %c0_20, %c0_21], %79 {strides = array<i32>} : memref<8x8x128xbf16, #tpu.memory_space<vmem>>, vector<1x8x128xbf16>,
    %c2_i32 = arith.constant 2 : i32
    %80 = arith.index_cast %c2_i32 : i32 to index
    %c0_22 = arith.constant 0 : index
    %c0_23 = arith.constant 0 : index
    %81 = vector.load %arg2[%80, %c0_22, %c0_23] : memref<8x8x512xbf16, #tpu.memory_space<vmem>>, vector<1x8x512xbf16>
    %82 = vector.shape_cast %81 : vector<1x8x512xbf16> to vector<8x512xbf16>
    %83 = arith.extf %82 : vector<8x512xbf16> to vector<8x512xf32>
    %84 = arith.truncf %74 : vector<8x128xf32> to vector<8x128xbf16>
    %cst_24 = arith.constant dense<0.000000e+00> : vector<8x512xf32>
    %85 = tpu.matmul %84, %3, %cst_24 {dimension_numbers = #tpu.dot_dimension_numbers<[1], [0], [0], [1], [0, 0, 1, 1], [], []>} : vector<8x128xbf16>, vector<128x512xbf16>, vector<8x512xf32> -> vector<8x512xf32>
    %86 = arith.addf %83, %85 : vector<8x512xf32>
    %87 = vector.extract_strided_slice %86 {offsets = [0, 0], sizes = [8, 128], strides = [1, 1]} : vector<8x512xf32> to vector<8x128xf32>
    %88 = arith.negf %87 : vector<8x128xf32>
    %89 = math.exp %88 : vector<8x128xf32>
    %cst_25 = arith.constant 1.000000e+00 : f32
    %90 = vector.broadcast %cst_25 : f32 to vector<8x128xf32>
    %91 = arith.addf %90, %89 : vector<8x128xf32>
    %92 = arith.divf %90, %91 : vector<8x128xf32>
    %93 = vector.extract_strided_slice %86 {offsets = [0, 128], sizes = [8, 128], strides = [1, 1]} : vector<8x512xf32> to vector<8x128xf32>
    %94 = arith.negf %93 : vector<8x128xf32>
    %95 = math.exp %94 : vector<8x128xf32>
    %cst_26 = arith.constant 1.000000e+00 : f32
    %96 = vector.broadcast %cst_26 : f32 to vector<8x128xf32>
    %97 = arith.addf %96, %95 : vector<8x128xf32>
    %98 = arith.divf %96, %97 : vector<8x128xf32>
    %99 = vector.extract_strided_slice %86 {offsets = [0, 256], sizes = [8, 128], strides = [1, 1]} : vector<8x512xf32> to vector<8x128xf32>
    %100 = math.tanh %99 : vector<8x128xf32>
    %101 = vector.extract_strided_slice %86 {offsets = [0, 384], sizes = [8, 128], strides = [1, 1]} : vector<8x512xf32> to vector<8x128xf32>
    %102 = arith.negf %101 : vector<8x128xf32>
    %103 = math.exp %102 : vector<8x128xf32>
    %cst_27 = arith.constant 1.000000e+00 : f32
    %104 = vector.broadcast %cst_27 : f32 to vector<8x128xf32>
    %105 = arith.addf %104, %103 : vector<8x128xf32>
    %106 = arith.divf %104, %105 : vector<8x128xf32>
    %107 = arith.mulf %98, %72 : vector<8x128xf32>
    %108 = arith.mulf %92, %100 : vector<8x128xf32>
    %109 = arith.addf %107, %108 : vector<8x128xf32>
    %110 = math.tanh %109 : vector<8x128xf32>
    %111 = arith.mulf %106, %110 : vector<8x128xf32>
    %112 = arith.truncf %111 : vector<8x128xf32> to vector<8x128xbf16>
    %113 = arith.index_cast %c2_i32 : i32 to index
    %c0_28 = arith.constant 0 : index
    %c0_29 = arith.constant 0 : index
    %114 = vector.load %arg6[%113, %c0_28, %c0_29] : memref<8x8x128xbf16, #tpu.memory_space<vmem>>, vector<1x8x128xbf16>
    %115 = vector.shape_cast %114 : vector<1x8x128xbf16> to vector<8x128xbf16>
    %116 = vector.shape_cast %112 : vector<8x128xbf16> to vector<1x8x128xbf16>
    tpu.vector_store %arg6[%113, %c0_28, %c0_29], %116 {strides = array<i32>} : memref<8x8x128xbf16, #tpu.memory_space<vmem>>, vector<1x8x128xbf16>,
    %c3_i32 = arith.constant 3 : i32
    %117 = arith.index_cast %c3_i32 : i32 to index
    %c0_30 = arith.constant 0 : index
    %c0_31 = arith.constant 0 : index
    %118 = vector.load %arg2[%117, %c0_30, %c0_31] : memref<8x8x512xbf16, #tpu.memory_space<vmem>>, vector<1x8x512xbf16>
    %119 = vector.shape_cast %118 : vector<1x8x512xbf16> to vector<8x512xbf16>
    %120 = arith.extf %119 : vector<8x512xbf16> to vector<8x512xf32>
    %121 = arith.truncf %111 : vector<8x128xf32> to vector<8x128xbf16>
    %cst_32 = arith.constant dense<0.000000e+00> : vector<8x512xf32>
    %122 = tpu.matmul %121, %3, %cst_32 {dimension_numbers = #tpu.dot_dimension_numbers<[1], [0], [0], [1], [0, 0, 1, 1], [], []>} : vector<8x128xbf16>, vector<128x512xbf16>, vector<8x512xf32> -> vector<8x512xf32>
    %123 = arith.addf %120, %122 : vector<8x512xf32>
    %124 = vector.extract_strided_slice %123 {offsets = [0, 0], sizes = [8, 128], strides = [1, 1]} : vector<8x512xf32> to vector<8x128xf32>
    %125 = arith.negf %124 : vector<8x128xf32>
    %126 = math.exp %125 : vector<8x128xf32>
    %cst_33 = arith.constant 1.000000e+00 : f32
    %127 = vector.broadcast %cst_33 : f32 to vector<8x128xf32>
    %128 = arith.addf %127, %126 : vector<8x128xf32>
    %129 = arith.divf %127, %128 : vector<8x128xf32>
    %130 = vector.extract_strided_slice %123 {offsets = [0, 128], sizes = [8, 128], strides = [1, 1]} : vector<8x512xf32> to vector<8x128xf32>
    %131 = arith.negf %130 : vector<8x128xf32>
    %132 = math.exp %131 : vector<8x128xf32>
    %cst_34 = arith.constant 1.000000e+00 : f32
    %133 = vector.broadcast %cst_34 : f32 to vector<8x128xf32>
    %134 = arith.addf %133, %132 : vector<8x128xf32>
    %135 = arith.divf %133, %134 : vector<8x128xf32>
    %136 = vector.extract_strided_slice %123 {offsets = [0, 256], sizes = [8, 128], strides = [1, 1]} : vector<8x512xf32> to vector<8x128xf32>
    %137 = math.tanh %136 : vector<8x128xf32>
    %138 = vector.extract_strided_slice %123 {offsets = [0, 384], sizes = [8, 128], strides = [1, 1]} : vector<8x512xf32> to vector<8x128xf32>
    %139 = arith.negf %138 : vector<8x128xf32>
    %140 = math.exp %139 : vector<8x128xf32>
    %cst_35 = arith.constant 1.000000e+00 : f32
    %141 = vector.broadcast %cst_35 : f32 to vector<8x128xf32>
    %142 = arith.addf %141, %140 : vector<8x128xf32>
    %143 = arith.divf %141, %142 : vector<8x128xf32>
    %144 = arith.mulf %135, %109 : vector<8x128xf32>
    %145 = arith.mulf %129, %137 : vector<8x128xf32>
    %146 = arith.addf %144, %145 : vector<8x128xf32>
    %147 = math.tanh %146 : vector<8x128xf32>
    %148 = arith.mulf %143, %147 : vector<8x128xf32>
    %149 = arith.truncf %148 : vector<8x128xf32> to vector<8x128xbf16>
    %150 = arith.index_cast %c3_i32 : i32 to index
    %c0_36 = arith.constant 0 : index
    %c0_37 = arith.constant 0 : index
    %151 = vector.load %arg6[%150, %c0_36, %c0_37] : memref<8x8x128xbf16, #tpu.memory_space<vmem>>, vector<1x8x128xbf16>
    %152 = vector.shape_cast %151 : vector<1x8x128xbf16> to vector<8x128xbf16>
    %153 = vector.shape_cast %149 : vector<8x128xbf16> to vector<1x8x128xbf16>
    tpu.vector_store %arg6[%150, %c0_36, %c0_37], %153 {strides = array<i32>} : memref<8x8x128xbf16, #tpu.memory_space<vmem>>, vector<1x8x128xbf16>,
    %c4_i32 = arith.constant 4 : i32
    %154 = arith.index_cast %c4_i32 : i32 to index
    %c0_38 = arith.constant 0 : index
    %c0_39 = arith.constant 0 : index
    %155 = vector.load %arg2[%154, %c0_38, %c0_39] : memref<8x8x512xbf16, #tpu.memory_space<vmem>>, vector<1x8x512xbf16>
    %156 = vector.shape_cast %155 : vector<1x8x512xbf16> to vector<8x512xbf16>
    %157 = arith.extf %156 : vector<8x512xbf16> to vector<8x512xf32>
    %158 = arith.truncf %148 : vector<8x128xf32> to vector<8x128xbf16>
    %cst_40 = arith.constant dense<0.000000e+00> : vector<8x512xf32>
    %159 = tpu.matmul %158, %3, %cst_40 {dimension_numbers = #tpu.dot_dimension_numbers<[1], [0], [0], [1], [0, 0, 1, 1], [], []>} : vector<8x128xbf16>, vector<128x512xbf16>, vector<8x512xf32> -> vector<8x512xf32>
    %160 = arith.addf %157, %159 : vector<8x512xf32>
    %161 = vector.extract_strided_slice %160 {offsets = [0, 0], sizes = [8, 128], strides = [1, 1]} : vector<8x512xf32> to vector<8x128xf32>
    %162 = arith.negf %161 : vector<8x128xf32>
    %163 = math.exp %162 : vector<8x128xf32>
    %cst_41 = arith.constant 1.000000e+00 : f32
    %164 = vector.broadcast %cst_41 : f32 to vector<8x128xf32>
    %165 = arith.addf %164, %163 : vector<8x128xf32>
    %166 = arith.divf %164, %165 : vector<8x128xf32>
    %167 = vector.extract_strided_slice %160 {offsets = [0, 128], sizes = [8, 128], strides = [1, 1]} : vector<8x512xf32> to vector<8x128xf32>
    %168 = arith.negf %167 : vector<8x128xf32>
    %169 = math.exp %168 : vector<8x128xf32>
    %cst_42 = arith.constant 1.000000e+00 : f32
    %170 = vector.broadcast %cst_42 : f32 to vector<8x128xf32>
    %171 = arith.addf %170, %169 : vector<8x128xf32>
    %172 = arith.divf %170, %171 : vector<8x128xf32>
    %173 = vector.extract_strided_slice %160 {offsets = [0, 256], sizes = [8, 128], strides = [1, 1]} : vector<8x512xf32> to vector<8x128xf32>
    %174 = math.tanh %173 : vector<8x128xf32>
    %175 = vector.extract_strided_slice %160 {offsets = [0, 384], sizes = [8, 128], strides = [1, 1]} : vector<8x512xf32> to vector<8x128xf32>
    %176 = arith.negf %175 : vector<8x128xf32>
    %177 = math.exp %176 : vector<8x128xf32>
    %cst_43 = arith.constant 1.000000e+00 : f32
    %178 = vector.broadcast %cst_43 : f32 to vector<8x128xf32>
    %179 = arith.addf %178, %177 : vector<8x128xf32>
    %180 = arith.divf %178, %179 : vector<8x128xf32>
    %181 = arith.mulf %172, %146 : vector<8x128xf32>
    %182 = arith.mulf %166, %174 : vector<8x128xf32>
    %183 = arith.addf %181, %182 : vector<8x128xf32>
    %184 = math.tanh %183 : vector<8x128xf32>
    %185 = arith.mulf %180, %184 : vector<8x128xf32>
    %186 = arith.truncf %185 : vector<8x128xf32> to vector<8x128xbf16>
    %187 = arith.index_cast %c4_i32 : i32 to index
    %c0_44 = arith.constant 0 : index
    %c0_45 = arith.constant 0 : index
    %188 = vector.load %arg6[%187, %c0_44, %c0_45] : memref<8x8x128xbf16, #tpu.memory_space<vmem>>, vector<1x8x128xbf16>
    %189 = vector.shape_cast %188 : vector<1x8x128xbf16> to vector<8x128xbf16>
    %190 = vector.shape_cast %186 : vector<8x128xbf16> to vector<1x8x128xbf16>
    tpu.vector_store %arg6[%187, %c0_44, %c0_45], %190 {strides = array<i32>} : memref<8x8x128xbf16, #tpu.memory_space<vmem>>, vector<1x8x128xbf16>,
    %c5_i32 = arith.constant 5 : i32
    %191 = arith.index_cast %c5_i32 : i32 to index
    %c0_46 = arith.constant 0 : index
    %c0_47 = arith.constant 0 : index
    %192 = vector.load %arg2[%191, %c0_46, %c0_47] : memref<8x8x512xbf16, #tpu.memory_space<vmem>>, vector<1x8x512xbf16>
    %193 = vector.shape_cast %192 : vector<1x8x512xbf16> to vector<8x512xbf16>
    %194 = arith.extf %193 : vector<8x512xbf16> to vector<8x512xf32>
    %195 = arith.truncf %185 : vector<8x128xf32> to vector<8x128xbf16>
    %cst_48 = arith.constant dense<0.000000e+00> : vector<8x512xf32>
    %196 = tpu.matmul %195, %3, %cst_48 {dimension_numbers = #tpu.dot_dimension_numbers<[1], [0], [0], [1], [0, 0, 1, 1], [], []>} : vector<8x128xbf16>, vector<128x512xbf16>, vector<8x512xf32> -> vector<8x512xf32>
    %197 = arith.addf %194, %196 : vector<8x512xf32>
    %198 = vector.extract_strided_slice %197 {offsets = [0, 0], sizes = [8, 128], strides = [1, 1]} : vector<8x512xf32> to vector<8x128xf32>
    %199 = arith.negf %198 : vector<8x128xf32>
    %200 = math.exp %199 : vector<8x128xf32>
    %cst_49 = arith.constant 1.000000e+00 : f32
    %201 = vector.broadcast %cst_49 : f32 to vector<8x128xf32>
    %202 = arith.addf %201, %200 : vector<8x128xf32>
    %203 = arith.divf %201, %202 : vector<8x128xf32>
    %204 = vector.extract_strided_slice %197 {offsets = [0, 128], sizes = [8, 128], strides = [1, 1]} : vector<8x512xf32> to vector<8x128xf32>
    %205 = arith.negf %204 : vector<8x128xf32>
    %206 = math.exp %205 : vector<8x128xf32>
    %cst_50 = arith.constant 1.000000e+00 : f32
    %207 = vector.broadcast %cst_50 : f32 to vector<8x128xf32>
    %208 = arith.addf %207, %206 : vector<8x128xf32>
    %209 = arith.divf %207, %208 : vector<8x128xf32>
    %210 = vector.extract_strided_slice %197 {offsets = [0, 256], sizes = [8, 128], strides = [1, 1]} : vector<8x512xf32> to vector<8x128xf32>
    %211 = math.tanh %210 : vector<8x128xf32>
    %212 = vector.extract_strided_slice %197 {offsets = [0, 384], sizes = [8, 128], strides = [1, 1]} : vector<8x512xf32> to vector<8x128xf32>
    %213 = arith.negf %212 : vector<8x128xf32>
    %214 = math.exp %213 : vector<8x128xf32>
    %cst_51 = arith.constant 1.000000e+00 : f32
    %215 = vector.broadcast %cst_51 : f32 to vector<8x128xf32>
    %216 = arith.addf %215, %214 : vector<8x128xf32>
    %217 = arith.divf %215, %216 : vector<8x128xf32>
    %218 = arith.mulf %209, %183 : vector<8x128xf32>
    %219 = arith.mulf %203, %211 : vector<8x128xf32>
    %220 = arith.addf %218, %219 : vector<8x128xf32>
    %221 = math.tanh %220 : vector<8x128xf32>
    %222 = arith.mulf %217, %221 : vector<8x128xf32>
    %223 = arith.truncf %222 : vector<8x128xf32> to vector<8x128xbf16>
    %224 = arith.index_cast %c5_i32 : i32 to index
    %c0_52 = arith.constant 0 : index
    %c0_53 = arith.constant 0 : index
    %225 = vector.load %arg6[%224, %c0_52, %c0_53] : memref<8x8x128xbf16, #tpu.memory_space<vmem>>, vector<1x8x128xbf16>
    %226 = vector.shape_cast %225 : vector<1x8x128xbf16> to vector<8x128xbf16>
    %227 = vector.shape_cast %223 : vector<8x128xbf16> to vector<1x8x128xbf16>
    tpu.vector_store %arg6[%224, %c0_52, %c0_53], %227 {strides = array<i32>} : memref<8x8x128xbf16, #tpu.memory_space<vmem>>, vector<1x8x128xbf16>,
    %c6_i32 = arith.constant 6 : i32
    %228 = arith.index_cast %c6_i32 : i32 to index
    %c0_54 = arith.constant 0 : index
    %c0_55 = arith.constant 0 : index
    %229 = vector.load %arg2[%228, %c0_54, %c0_55] : memref<8x8x512xbf16, #tpu.memory_space<vmem>>, vector<1x8x512xbf16>
    %230 = vector.shape_cast %229 : vector<1x8x512xbf16> to vector<8x512xbf16>
    %231 = arith.extf %230 : vector<8x512xbf16> to vector<8x512xf32>
    %232 = arith.truncf %222 : vector<8x128xf32> to vector<8x128xbf16>
    %cst_56 = arith.constant dense<0.000000e+00> : vector<8x512xf32>
    %233 = tpu.matmul %232, %3, %cst_56 {dimension_numbers = #tpu.dot_dimension_numbers<[1], [0], [0], [1], [0, 0, 1, 1], [], []>} : vector<8x128xbf16>, vector<128x512xbf16>, vector<8x512xf32> -> vector<8x512xf32>
    %234 = arith.addf %231, %233 : vector<8x512xf32>
    %235 = vector.extract_strided_slice %234 {offsets = [0, 0], sizes = [8, 128], strides = [1, 1]} : vector<8x512xf32> to vector<8x128xf32>
    %236 = arith.negf %235 : vector<8x128xf32>
    %237 = math.exp %236 : vector<8x128xf32>
    %cst_57 = arith.constant 1.000000e+00 : f32
    %238 = vector.broadcast %cst_57 : f32 to vector<8x128xf32>
    %239 = arith.addf %238, %237 : vector<8x128xf32>
    %240 = arith.divf %238, %239 : vector<8x128xf32>
    %241 = vector.extract_strided_slice %234 {offsets = [0, 128], sizes = [8, 128], strides = [1, 1]} : vector<8x512xf32> to vector<8x128xf32>
    %242 = arith.negf %241 : vector<8x128xf32>
    %243 = math.exp %242 : vector<8x128xf32>
    %cst_58 = arith.constant 1.000000e+00 : f32
    %244 = vector.broadcast %cst_58 : f32 to vector<8x128xf32>
    %245 = arith.addf %244, %243 : vector<8x128xf32>
    %246 = arith.divf %244, %245 : vector<8x128xf32>
    %247 = vector.extract_strided_slice %234 {offsets = [0, 256], sizes = [8, 128], strides = [1, 1]} : vector<8x512xf32> to vector<8x128xf32>
    %248 = math.tanh %247 : vector<8x128xf32>
    %249 = vector.extract_strided_slice %234 {offsets = [0, 384], sizes = [8, 128], strides = [1, 1]} : vector<8x512xf32> to vector<8x128xf32>
    %250 = arith.negf %249 : vector<8x128xf32>
    %251 = math.exp %250 : vector<8x128xf32>
    %cst_59 = arith.constant 1.000000e+00 : f32
    %252 = vector.broadcast %cst_59 : f32 to vector<8x128xf32>
    %253 = arith.addf %252, %251 : vector<8x128xf32>
    %254 = arith.divf %252, %253 : vector<8x128xf32>
    %255 = arith.mulf %246, %220 : vector<8x128xf32>
    %256 = arith.mulf %240, %248 : vector<8x128xf32>
    %257 = arith.addf %255, %256 : vector<8x128xf32>
    %258 = math.tanh %257 : vector<8x128xf32>
    %259 = arith.mulf %254, %258 : vector<8x128xf32>
    %260 = arith.truncf %259 : vector<8x128xf32> to vector<8x128xbf16>
    %261 = arith.index_cast %c6_i32 : i32 to index
    %c0_60 = arith.constant 0 : index
    %c0_61 = arith.constant 0 : index
    %262 = vector.load %arg6[%261, %c0_60, %c0_61] : memref<8x8x128xbf16, #tpu.memory_space<vmem>>, vector<1x8x128xbf16>
    %263 = vector.shape_cast %262 : vector<1x8x128xbf16> to vector<8x128xbf16>
    %264 = vector.shape_cast %260 : vector<8x128xbf16> to vector<1x8x128xbf16>
    tpu.vector_store %arg6[%261, %c0_60, %c0_61], %264 {strides = array<i32>} : memref<8x8x128xbf16, #tpu.memory_space<vmem>>, vector<1x8x128xbf16>,
    %c7_i32 = arith.constant 7 : i32
    %265 = arith.index_cast %c7_i32 : i32 to index
    %c0_62 = arith.constant 0 : index
    %c0_63 = arith.constant 0 : index
    %266 = vector.load %arg2[%265, %c0_62, %c0_63] : memref<8x8x512xbf16, #tpu.memory_space<vmem>>, vector<1x8x512xbf16>
    %267 = vector.shape_cast %266 : vector<1x8x512xbf16> to vector<8x512xbf16>
    %268 = arith.extf %267 : vector<8x512xbf16> to vector<8x512xf32>
    %269 = arith.truncf %259 : vector<8x128xf32> to vector<8x128xbf16>
    %cst_64 = arith.constant dense<0.000000e+00> : vector<8x512xf32>
    %270 = tpu.matmul %269, %3, %cst_64 {dimension_numbers = #tpu.dot_dimension_numbers<[1], [0], [0], [1], [0, 0, 1, 1], [], []>} : vector<8x128xbf16>, vector<128x512xbf16>, vector<8x512xf32> -> vector<8x512xf32>
    %271 = arith.addf %268, %270 : vector<8x512xf32>
    %272 = vector.extract_strided_slice %271 {offsets = [0, 0], sizes = [8, 128], strides = [1, 1]} : vector<8x512xf32> to vector<8x128xf32>
    %273 = arith.negf %272 : vector<8x128xf32>
    %274 = math.exp %273 : vector<8x128xf32>
    %cst_65 = arith.constant 1.000000e+00 : f32
    %275 = vector.broadcast %cst_65 : f32 to vector<8x128xf32>
    %276 = arith.addf %275, %274 : vector<8x128xf32>
    %277 = arith.divf %275, %276 : vector<8x128xf32>
    %278 = vector.extract_strided_slice %271 {offsets = [0, 128], sizes = [8, 128], strides = [1, 1]} : vector<8x512xf32> to vector<8x128xf32>
    %279 = arith.negf %278 : vector<8x128xf32>
    %280 = math.exp %279 : vector<8x128xf32>
    %cst_66 = arith.constant 1.000000e+00 : f32
    %281 = vector.broadcast %cst_66 : f32 to vector<8x128xf32>
    %282 = arith.addf %281, %280 : vector<8x128xf32>
    %283 = arith.divf %281, %282 : vector<8x128xf32>
    %284 = vector.extract_strided_slice %271 {offsets = [0, 256], sizes = [8, 128], strides = [1, 1]} : vector<8x512xf32> to vector<8x128xf32>
    %285 = math.tanh %284 : vector<8x128xf32>
    %286 = vector.extract_strided_slice %271 {offsets = [0, 384], sizes = [8, 128], strides = [1, 1]} : vector<8x512xf32> to vector<8x128xf32>
    %287 = arith.negf %286 : vector<8x128xf32>
    %288 = math.exp %287 : vector<8x128xf32>
    %cst_67 = arith.constant 1.000000e+00 : f32
    %289 = vector.broadcast %cst_67 : f32 to vector<8x128xf32>
    %290 = arith.addf %289, %288 : vector<8x128xf32>
    %291 = arith.divf %289, %290 : vector<8x128xf32>
    %292 = arith.mulf %283, %257 : vector<8x128xf32>
    %293 = arith.mulf %277, %285 : vector<8x128xf32>
    %294 = arith.addf %292, %293 : vector<8x128xf32>
    %295 = math.tanh %294 : vector<8x128xf32>
    %296 = arith.mulf %291, %295 : vector<8x128xf32>
    %297 = arith.truncf %296 : vector<8x128xf32> to vector<8x128xbf16>
    %298 = arith.index_cast %c7_i32 : i32 to index
    %c0_68 = arith.constant 0 : index
    %c0_69 = arith.constant 0 : index
    %299 = vector.load %arg6[%298, %c0_68, %c0_69] : memref<8x8x128xbf16, #tpu.memory_space<vmem>>, vector<1x8x128xbf16>
    %300 = vector.shape_cast %299 : vector<1x8x128xbf16> to vector<8x128xbf16>
    %301 = vector.shape_cast %297 : vector<8x128xbf16> to vector<1x8x128xbf16>
    tpu.vector_store %arg6[%298, %c0_68, %c0_69], %301 {strides = array<i32>} : memref<8x8x128xbf16, #tpu.memory_space<vmem>>, vector<1x8x128xbf16>,
    %c8_i32 = arith.constant 8 : i32
    %c0_70 = arith.constant 0 : index
    %c0_71 = arith.constant 0 : index
    %302 = vector.load %arg7[%c0_70, %c0_71] : memref<8x128xf32, #tpu.memory_space<vmem>>, vector<8x128xf32>
    tpu.vector_store %arg7[%c0_70, %c0_71], %296 {strides = array<i32>} : memref<8x128xf32, #tpu.memory_space<vmem>>, vector<8x128xf32>,
    %c0_72 = arith.constant 0 : index
    %c0_73 = arith.constant 0 : index
    %303 = vector.load %arg8[%c0_72, %c0_73] : memref<8x128xf32, #tpu.memory_space<vmem>>, vector<8x128xf32>
    tpu.vector_store %arg8[%c0_72, %c0_73], %294 {strides = array<i32>} : memref<8x128xf32, #tpu.memory_space<vmem>>, vector<8x128xf32>,
    return
  }
  func.func @transform_0(%arg0: i32, %arg1: i32) -> (i32, i32, i32) {
    %c0_i32 = arith.constant 0 : i32
    %c0_i32_0 = arith.constant 0 : i32
    return %arg1, %arg0, %c0_i32 : i32, i32, i32
  }
  func.func @transform_1(%arg0: i32, %arg1: i32) -> (i32, i32) {
    %c0_i32 = arith.constant 0 : i32
    %c0_i32_0 = arith.constant 0 : i32
    return %arg0, %c0_i32 : i32, i32
  }
  func.func @transform_2(%arg0: i32, %arg1: i32) -> (i32, i32) {
    %c0_i32 = arith.constant 0 : i32
    %c0_i32_0 = arith.constant 0 : i32
    return %arg0, %c0_i32 : i32, i32
  }
  func.func @transform_3(%arg0: i32, %arg1: i32) -> (i32, i32) {
    %c0_i32 = arith.constant 0 : i32
    %c0_i32_0 = arith.constant 0 : i32
    %c0_i32_1 = arith.constant 0 : i32
    return %c0_i32, %c0_i32_0 : i32, i32
  }
  func.func @transform_4(%arg0: i32, %arg1: i32) -> (i32, i32, i32) {
    %c0_i32 = arith.constant 0 : i32
    %c0_i32_0 = arith.constant 0 : i32
    return %arg1, %arg0, %c0_i32 : i32, i32, i32
  }
  func.func @transform_5(%arg0: i32, %arg1: i32) -> (i32, i32) {
    %c0_i32 = arith.constant 0 : i32
    %c0_i32_0 = arith.constant 0 : i32
    return %arg0, %c0_i32 : i32, i32
  }
  func.func @transform_6(%arg0: i32, %arg1: i32) -> (i32, i32) {
    %c0_i32 = arith.constant 0 : i32
    %c0_i32_0 = arith.constant 0 : i32
    return %arg0, %c0_i32 : i32, i32
  }
}

module attributes {stable_mosaic.version = 11 : i64} {
  func.func @matmul_bias_kernel(%arg0: i32, %arg1: memref<64x128xbf16, #tpu.memory_space<vmem>>, %arg2: memref<128x128xbf16, #tpu.memory_space<vmem>>, %arg3: memref<1x128xf32, #tpu.memory_space<vmem>>, %arg4: memref<64x128xf32, #tpu.memory_space<vmem>>) attributes {dimension_semantics = [#tpu.dimension_semantics<parallel>], iteration_bounds = array<i64: 1>, scalar_prefetch = 0 : i64, scratch_operands = 0 : i64, tpu.core_type = #tpu.core_type<tc>, window_params = [{transform_indices = @transform_0, window_bounds = array<i64: 64, 128>}, {pipeline_mode = #tpu.pipeline_mode<synchronous>, transform_indices = @transform_1, window_bounds = array<i64: 128, 128>}, {pipeline_mode = #tpu.pipeline_mode<synchronous>, transform_indices = @transform_2, window_bounds = array<i64: 1, 128>}, {transform_indices = @transform_3, window_bounds = array<i64: 64, 128>}]} {
    %c0 = arith.constant 0 : index
    %c0_0 = arith.constant 0 : index
    %0 = vector.load %arg1[%c0, %c0_0] : memref<64x128xbf16, #tpu.memory_space<vmem>>, vector<64x128xbf16>
    %c0_1 = arith.constant 0 : index
    %c0_2 = arith.constant 0 : index
    %1 = vector.load %arg2[%c0_1, %c0_2] : memref<128x128xbf16, #tpu.memory_space<vmem>>, vector<128x128xbf16>
    %cst = arith.constant dense<0.000000e+00> : vector<64x128xf32>
    %2 = tpu.matmul %0, %1, %cst {dimension_numbers = #tpu.dot_dimension_numbers<[1], [0], [0], [1], [0, 0, 1, 1], [], []>} : vector<64x128xbf16>, vector<128x128xbf16>, vector<64x128xf32> -> vector<64x128xf32>
    %c0_3 = arith.constant 0 : index
    %c0_4 = arith.constant 0 : index
    %3 = vector.load %arg3[%c0_3, %c0_4] : memref<1x128xf32, #tpu.memory_space<vmem>>, vector<1x128xf32>
    %4 = vector.broadcast %3 : vector<1x128xf32> to vector<64x128xf32>
    %5 = arith.addf %2, %4 : vector<64x128xf32>
    %c0_5 = arith.constant 0 : index
    %c0_6 = arith.constant 0 : index
    %6 = vector.load %arg4[%c0_5, %c0_6] : memref<64x128xf32, #tpu.memory_space<vmem>>, vector<64x128xf32>
    tpu.vector_store %arg4[%c0_5, %c0_6], %5 {strides = array<i32>} : memref<64x128xf32, #tpu.memory_space<vmem>>, vector<64x128xf32>,
    return
  }
  func.func @transform_0(%arg0: i32) -> (i32, i32) {
    %c0_i32 = arith.constant 0 : i32
    %c0_i32_0 = arith.constant 0 : i32
    return %arg0, %c0_i32 : i32, i32
  }
  func.func @transform_1(%arg0: i32) -> (i32, i32) {
    %c0_i32 = arith.constant 0 : i32
    %c0_i32_0 = arith.constant 0 : i32
    %c0_i32_1 = arith.constant 0 : i32
    return %c0_i32, %c0_i32_0 : i32, i32
  }
  func.func @transform_2(%arg0: i32) -> (i32, i32) {
    %c0_i32 = arith.constant 0 : i32
    %c0_i32_0 = arith.constant 0 : i32
    %c0_i32_1 = arith.constant 0 : i32
    return %c0_i32, %c0_i32_0 : i32, i32
  }
  func.func @transform_3(%arg0: i32) -> (i32, i32) {
    %c0_i32 = arith.constant 0 : i32
    %c0_i32_0 = arith.constant 0 : i32
    return %arg0, %c0_i32 : i32, i32
  }
}

</mosaic_0001>

<bundles_post_ra>
// kernel: sentiment_lstm_forward.9
= control target key start
LH: loop header
LB: loop body
LE: loop exit
PB: predicated region body
PF: predicated region fallthrough
CT: control target
= control target key end

     0   :  { %s323_s1 = inlined_call_operand.vmem [shape: bf16[128,128], index: 1, kind: input, shape index: {}]   ;;  %s324_s2 = inlined_call_operand.vmem [shape: f32[1,128], index: 2, kind: input, shape index: {}]   ;;  %s325_s0 = inlined_call_operand.vmem [shape: bf16[64,128], index: 0, kind: input, shape index: {}]   ;;  %s326_s3 = inlined_call_operand.vmem [shape: f32[64,128], index: 3, kind: output, shape index: {}]  }
   0x1   :  { %v214_v0 = vld [vmem:[%s323_s1 + $0x38] sm:$0xff]  ;;  %v213_v1 = vld [vmem:[%s323_s1 + $0x30] sm:$0xff]  ;;  %v212_v2 = vld [vmem:[%s323_s1 + $0x28] sm:$0xff] }
   0x2   :  { %114 = vmatpush.bf16.msra.mxu0 %v214_v0  ;;  %215 = vmatpush.bf16.msra.mxu1 %v214_v0  ;;  %v211_v3 = vld [vmem:[%s323_s1 + $0x20] sm:$0xff]  ;;  %v210_v4 = vld [vmem:[%s323_s1 + $0x18] sm:$0xff]  ;;  %v209_v5 = vld [vmem:[%s323_s1 + $0x10] sm:$0xff] }
   0x3   :  { %216 = vmatpush.bf16.msra.mxu2 %v214_v0  ;;  %217 = vmatpush.bf16.msra.mxu3 %v214_v0  ;;  %v208_v6 = vld [vmem:[%s323_s1 + $0x8] sm:$0xff]  ;;  %v207_v7 = vld [vmem:[%s323_s1] sm:$0xff]  ;;  %v205_v10 = vld [vmem:[%s325_s0 + $0x10] sm:$0xff] }
   0x4   :  { %v203_v8 = vld [vmem:[%s325_s0] sm:$0xff]  ;;  %v204_v9 = vld [vmem:[%s325_s0 + $0x8] sm:$0xff]  ;;  %v206_v11 = vld [vmem:[%s325_s0 + $0x18] sm:$0xff] }
   0x5   :  { %v239_v12 = vld [vmem:[%s324_s2] ss:$0 sm:$0xff] }
   0x6   :  { %115 = vmatpush.bf16.msra.mxu0 %v213_v1  ;;  %218 = vmatpush.bf16.msra.mxu1 %v213_v1 }
   0x7   :  { %219 = vmatpush.bf16.msra.mxu2 %v213_v1  ;;  %220 = vmatpush.bf16.msra.mxu3 %v213_v1 }
   0xa   :  { %116 = vmatpush.bf16.msra.mxu0 %v212_v2  ;;  %221 = vmatpush.bf16.msra.mxu1 %v212_v2 }
   0xb   :  { %222 = vmatpush.bf16.msra.mxu2 %v212_v2  ;;  %223 = vmatpush.bf16.msra.mxu3 %v212_v2 }
   0xe   :  { %117 = vmatpush.bf16.msra.mxu0 %v211_v3  ;;  %224 = vmatpush.bf16.msra.mxu1 %v211_v3 }
   0xf   :  { %225 = vmatpush.bf16.msra.mxu2 %v211_v3  ;;  %226 = vmatpush.bf16.msra.mxu3 %v211_v3 }
  0x12   :  { %118 = vmatpush.bf16.msra.mxu0 %v210_v4  ;;  %227 = vmatpush.bf16.msra.mxu1 %v210_v4 }
  0x13   :  { %228 = vmatpush.bf16.msra.mxu2 %v210_v4  ;;  %229 = vmatpush.bf16.msra.mxu3 %v210_v4 }
  0x16   :  { %119 = vmatpush.bf16.msra.mxu0 %v209_v5  ;;  %230 = vmatpush.bf16.msra.mxu1 %v209_v5 }
  0x17   :  { %231 = vmatpush.bf16.msra.mxu2 %v209_v5  ;;  %232 = vmatpush.bf16.msra.mxu3 %v209_v5 }
  0x1a   :  { %120 = vmatpush.bf16.msra.mxu0 %v208_v6  ;;  %233 = vmatpush.bf16.msra.mxu1 %v208_v6 }
  0x1b   :  { %234 = vmatpush.bf16.msra.mxu2 %v208_v6  ;;  %235 = vmatpush.bf16.msra.mxu3 %v208_v6 }
  0x1e   :  { %121 = vmatpush.bf16.msra.mxu0 %v207_v7  ;;  %236 = vmatpush.bf16.msra.mxu1 %v207_v7 }
  0x1f   :  { %237 = vmatpush.bf16.msra.mxu2 %v207_v7  ;;  %238 = vmatpush.bf16.msra.mxu3 %v207_v7 }
  0x21   :  { %122 = vmatmul.bf16.vlgmr.msra.gmra.mxu0 %v203_v8  ;;  %127 = vmatmul.bf16.vlgmr.msra.gmra.mxu1 %v204_v9 }
  0x22   :  { %132 = vmatmul.bf16.vlgmr.msra.gmra.mxu2 %v205_v10  ;;  %137 = vmatmul.bf16.vlgmr.msra.gmra.mxu3 %v206_v11 }
  0x9e   :  { %v123_v13 = vpop.f32.mrf.mxu0  ;;  %v128_v14 = vpop.f32.mrf.mxu1 }
  0x9f   :  { %v124_v15 = vadd.f32 %v239_v12, %v123_v13  ;;  %v129_v16 = vadd.f32 %v239_v12, %v128_v14 }
  0xa1   :  { %143 = vst [vmem:[%s326_s3] sm:$0xff] %v124_v15 }
  0xa2   :  { %145 = vst [vmem:[%s326_s3 + $0x10] sm:$0xff] %v129_v16 }
  0xa5   :  { %v133_v17 = vpop.f32.mrf.mxu2  ;;  %v138_v18 = vpop.f32.mrf.mxu3 }
  0xa6   :  { %v134_v19 = vadd.f32 %v239_v12, %v133_v17  ;;  %v139_v20 = vadd.f32 %v239_v12, %v138_v18  ;;  %v125_v21 = vpop.f32.mrf.mxu0  ;;  %v130_v22 = vpop.f32.mrf.mxu1 }
  0xa7   :  { %v126_v23 = vadd.f32 %v239_v12, %v125_v21  ;;  %v131_v24 = vadd.f32 %v239_v12, %v130_v22 }
  0xa8   :  { %147 = vst [vmem:[%s326_s3 + $0x20] sm:$0xff] %v134_v19 }
  0xa9   :  { %149 = vst [vmem:[%s326_s3 + $0x30] sm:$0xff] %v139_v20 }
  0xaa   :  { %144 = vst [vmem:[%s326_s3 + $0x8] sm:$0xff] %v126_v23 }
  0xab   :  { %146 = vst [vmem:[%s326_s3 + $0x18] sm:$0xff] %v131_v24 }
  0xad   :  { %v135_v25 = vpop.f32.mrf.mxu2  ;;  %v140_v26 = vpop.f32.mrf.mxu3 }
  0xae   :  { %v136_v27 = vadd.f32 %v239_v12, %v135_v25  ;;  %v141_v28 = vadd.f32 %v239_v12, %v140_v26 }
  0xb0   :  { %148 = vst [vmem:[%s326_s3 + $0x28] sm:$0xff] %v136_v27 }
  0xb1   :  { %150 = vst [vmem:[%s326_s3 + $0x38] sm:$0xff] %v141_v28 }

// kernel: sentiment_lstm_forward.5
= control target key start
LH: loop header
LB: loop body
LE: loop exit
PB: predicated region body
PF: predicated region fallthrough
CT: control target
= control target key end

     0   :  { %s895_s1 = inlined_call_operand.vmem [shape: bf16[128,512], index: 1, kind: input, shape index: {}]   ;;  %s896_s0 = inlined_call_operand.vmem [shape: bf16[64,128], index: 0, kind: input, shape index: {}]   ;;  %s897_s2 = inlined_call_operand.vmem [shape: f32[1,512], index: 2, kind: input, shape index: {}]   ;;  %s898_s3 = inlined_call_operand.vmem [shape: bf16[64,512], index: 3, kind: output, shape index: {}]  }
   0x1   :  { %v530_v0 = vld [vmem:[%s895_s1 + $0xe0] sm:$0xf]  ;;  %v578_v1 = vld [vmem:[%s895_s1 + $0xec] sm:$0xf0]  ;;  %v576_v2 = vld [vmem:[%s895_s1 + $0xe4] sm:$0xf] }
   0x2   :  { %v531_v3 = vor.u32 %v578_v1, %v530_v0  ;;  %v532_v4 = vld [vmem:[%s895_s1 + $0xf0] sm:$0xf0]  ;;  %v538_v5 = vld [vmem:[%s895_s1 + $0xe8] sm:$0xf]  ;;  %v579_v6 = vld [vmem:[%s895_s1 + $0xf4] sm:$0xf0] }
   0x3   :  { %v535_v7 = vor.u32 %v576_v2, %v532_v4  ;;  %v539_v8 = vor.u32 %v579_v6, %v538_v5  ;;  %v577_v9 = vld [vmem:[%s895_s1 + $0xec] sm:$0xf]  ;;  %v540_v10 = vld [vmem:[%s895_s1 + $0xf8] sm:$0xf0]  ;;  %v514_v11 = vld [vmem:[%s895_s1 + $0xc0] sm:$0xf] }
   0x4   :  { %248 = vmatpush.bf16.msra.mxu0 %v531_v3  ;;  %v543_v12 = vor.u32 %v577_v9, %v540_v10  ;;  %v574_v13 = vld [vmem:[%s895_s1 + $0xcc] sm:$0xf0]  ;;  %v572_v14 = vld [vmem:[%s895_s1 + $0xc4] sm:$0xf]  ;;  %v516_v15 = vld [vmem:[%s895_s1 + $0xd0] sm:$0xf0] }
   0x5   :  { %277 = vmatpush.bf16.msra.mxu1 %v535_v7  ;;  %306 = vmatpush.bf16.msra.mxu2 %v539_v8  ;;  %v515_v16 = vor.u32 %v574_v13, %v514_v11  ;;  %v519_v17 = vor.u32 %v572_v14, %v516_v15  ;;  %v522_v18 = vld [vmem:[%s895_s1 + $0xc8] sm:$0xf]  ;;  %v575_v19 = vld [vmem:[%s895_s1 + $0xd4] sm:$0xf0]  ;;  %v573_v20 = vld [vmem:[%s895_s1 + $0xcc] sm:$0xf] }
   0x6   :  { %335 = vmatpush.bf16.msra.mxu3 %v543_v12  ;;  %v523_v21 = vor.u32 %v575_v19, %v522_v18  ;;  %v524_v22 = vld [vmem:[%s895_s1 + $0xd8] sm:$0xf0]  ;;  %v498_v23 = vld [vmem:[%s895_s1 + $0xa0] sm:$0xf]  ;;  %v570_v24 = vld [vmem:[%s895_s1 + $0xac] sm:$0xf0] }
   0x7   :  { %v527_v25 = vor.u32 %v573_v20, %v524_v22  ;;  %v568_v26 = vld [vmem:[%s895_s1 + $0xa4] sm:$0xf]  ;;  %v500_v27 = vld [vmem:[%s895_s1 + $0xb0] sm:$0xf0]  ;;  %v506_v28 = vld [vmem:[%s895_s1 + $0xa8] sm:$0xf]  ;;  %v499_v29 = vor.u32 %v570_v24, %v498_v23 }
   0x8   :  { %249 = vmatpush.bf16.msra.mxu0 %v515_v16  ;;  %v571_v30 = vld [vmem:[%s895_s1 + $0xb4] sm:$0xf0]  ;;  %v569_v31 = vld [vmem:[%s895_s1 + $0xac] sm:$0xf]  ;;  %v508_v32 = vld [vmem:[%s895_s1 + $0xb8] sm:$0xf0]  ;;  %v503_v33 = vor.u32 %v568_v26, %v500_v27 }
   0x9   :  { %278 = vmatpush.bf16.msra.mxu1 %v519_v17  ;;  %307 = vmatpush.bf16.msra.mxu2 %v523_v21  ;;  %v507_v34 = vor.u32 %v571_v30, %v506_v28  ;;  %v482_v35 = vld [vmem:[%s895_s1 + $0x80] sm:$0xf]  ;;  %v566_v36 = vld [vmem:[%s895_s1 + $0x8c] sm:$0xf0]  ;;  %v564_v37 = vld [vmem:[%s895_s1 + $0x84] sm:$0xf]  ;;  %v511_v38 = vor.u32 %v569_v31, %v508_v32 }
   0xa   :  { %336 = vmatpush.bf16.msra.mxu3 %v527_v25  ;;  %v484_v39 = vld [vmem:[%s895_s1 + $0x90] sm:$0xf0]  ;;  %v490_v40 = vld [vmem:[%s895_s1 + $0x88] sm:$0xf]  ;;  %v567_v41 = vld [vmem:[%s895_s1 + $0x94] sm:$0xf0]  ;;  %v483_v44 = vor.u32 %v566_v36, %v482_v35 }
   0xb   :  { %v565_v42 = vld [vmem:[%s895_s1 + $0x8c] sm:$0xf]  ;;  %v492_v43 = vld [vmem:[%s895_s1 + $0x98] sm:$0xf0]  ;;  %v487_v45 = vor.u32 %v564_v37, %v484_v39  ;;  %v491_v46 = vor.u32 %v567_v41, %v490_v40  ;;  %v466_v47 = vld [vmem:[%s895_s1 + $0x60] sm:$0xf] }
   0xc   :  { %250 = vmatpush.bf16.msra.mxu0 %v499_v29  ;;  %v562_v48 = vld [vmem:[%s895_s1 + $0x6c] sm:$0xf0]  ;;  %v560_v49 = vld [vmem:[%s895_s1 + $0x64] sm:$0xf]  ;;  %v495_v50 = vor.u32 %v565_v42, %v492_v43  ;;  %v468_v51 = vld [vmem:[%s895_s1 + $0x70] sm:$0xf0] }
   0xd   :  { %279 = vmatpush.bf16.msra.mxu1 %v503_v33  ;;  %308 = vmatpush.bf16.msra.mxu2 %v507_v34  ;;  %v474_v52 = vld [vmem:[%s895_s1 + $0x68] sm:$0xf]  ;;  %v563_v53 = vld [vmem:[%s895_s1 + $0x74] sm:$0xf0]  ;;  %v561_v54 = vld [vmem:[%s895_s1 + $0x6c] sm:$0xf]  ;;  %v467_v56 = vor.u32 %v562_v48, %v466_v47  ;;  %v471_v57 = vor.u32 %v560_v49, %v468_v51 }
   0xe   :  { %337 = vmatpush.bf16.msra.mxu3 %v511_v38  ;;  %v476_v55 = vld [vmem:[%s895_s1 + $0x78] sm:$0xf0]  ;;  %v475_v58 = vor.u32 %v563_v53, %v474_v52  ;;  %v450_v59 = vld [vmem:[%s895_s1 + $0x40] sm:$0xf]  ;;  %v558_v60 = vld [vmem:[%s895_s1 + $0x4c] sm:$0xf0] }
   0xf   :  { %v556_v61 = vld [vmem:[%s895_s1 + $0x44] sm:$0xf]  ;;  %v479_v62 = vor.u32 %v561_v54, %v476_v55  ;;  %v452_v63 = vld [vmem:[%s895_s1 + $0x50] sm:$0xf0]  ;;  %v458_v0 = vld [vmem:[%s895_s1 + $0x48] sm:$0xf]  ;;  %v451_v4 = vor.u32 %v558_v60, %v450_v59 }
  0x10   :  { %251 = vmatpush.bf16.msra.mxu0 %v483_v44  ;;  %v559_v1 = vld [vmem:[%s895_s1 + $0x54] sm:$0xf0]  ;;  %v557_v2 = vld [vmem:[%s895_s1 + $0x4c] sm:$0xf]  ;;  %v460_v3 = vld [vmem:[%s895_s1 + $0x58] sm:$0xf0]  ;;  %v455_v5 = vor.u32 %v556_v61, %v452_v63 }
  0x11   :  { %280 = vmatpush.bf16.msra.mxu1 %v487_v45  ;;  %309 = vmatpush.bf16.msra.mxu2 %v491_v46  ;;  %v459_v6 = vor.u32 %v559_v1, %v458_v0  ;;  %v434_v7 = vld [vmem:[%s895_s1 + $0x20] sm:$0xf]  ;;  %v554_v8 = vld [vmem:[%s895_s1 + $0x2c] sm:$0xf0]  ;;  %v552_v9 = vld [vmem:[%s895_s1 + $0x24] sm:$0xf]  ;;  %v463_v10 = vor.u32 %v557_v2, %v460_v3 }
  0x12   :  { %338 = vmatpush.bf16.msra.mxu3 %v495_v50  ;;  %v436_v11 = vld [vmem:[%s895_s1 + $0x30] sm:$0xf0]  ;;  %v442_v12 = vld [vmem:[%s895_s1 + $0x28] sm:$0xf]  ;;  %v555_v13 = vld [vmem:[%s895_s1 + $0x34] sm:$0xf0]  ;;  %v435_v16 = vor.u32 %v554_v8, %v434_v7 }
  0x13   :  { %v553_v14 = vld [vmem:[%s895_s1 + $0x2c] sm:$0xf]  ;;  %v444_v15 = vld [vmem:[%s895_s1 + $0x38] sm:$0xf0]  ;;  %v439_v17 = vor.u32 %v552_v9, %v436_v11  ;;  %v443_v18 = vor.u32 %v555_v13, %v442_v12  ;;  %v418_v19 = vld [vmem:[%s895_s1] sm:$0xf] }
  0x14   :  { %252 = vmatpush.bf16.msra.mxu0 %v467_v56  ;;  %v550_v20 = vld [vmem:[%s895_s1 + $0xc] sm:$0xf0]  ;;  %v548_v21 = vld [vmem:[%s895_s1 + $0x4] sm:$0xf]  ;;  %v447_v22 = vor.u32 %v553_v14, %v444_v15  ;;  %v420_v23 = vld [vmem:[%s895_s1 + $0x10] sm:$0xf0] }
  0x15   :  { %281 = vmatpush.bf16.msra.mxu1 %v471_v57  ;;  %310 = vmatpush.bf16.msra.mxu2 %v475_v58  ;;  %v426_v24 = vld [vmem:[%s895_s1 + $0x8] sm:$0xf]  ;;  %v551_v25 = vld [vmem:[%s895_s1 + $0x14] sm:$0xf0]  ;;  %v549_v26 = vld [vmem:[%s895_s1 + $0xc] sm:$0xf]  ;;  %v419_v28 = vor.u32 %v550_v20, %v418_v19  ;;  %v423_v29 = vor.u32 %v548_v21, %v420_v23 }
  0x16   :  { %339 = vmatpush.bf16.msra.mxu3 %v479_v62  ;;  %v428_v27 = vld [vmem:[%s895_s1 + $0x18] sm:$0xf0]  ;;  %v427_v30 = vor.u32 %v551_v25, %v426_v24  ;;  %v544_v32 = vld [vmem:[%s896_s0] sm:$0xff]  ;;  %v545_v33 = vld [vmem:[%s896_s0 + $0x8] sm:$0xff] }
  0x17   :  { %v431_v31 = vor.u32 %v549_v26, %v428_v27  ;;  %v546_v34 = vld [vmem:[%s896_s0 + $0x10] sm:$0xff]  ;;  %v547_v35 = vld [vmem:[%s896_s0 + $0x18] sm:$0xff]  ;;  %v54_v36 = vld [vmem:[%s897_s2] sm:$0xf] }
  0x18   :  { %253 = vmatpush.bf16.msra.mxu0 %v451_v4  ;;  %v807_v37 = vperm.slane %v54_v36, 0  ;;  %v809_v38 = vperm.slane %v54_v36, 1  ;;  %v813_v44 = vperm.slane %v54_v36, 2  ;;  %v815_v45 = vperm.slane %v54_v36, 3 }
  0x19   :  { %282 = vmatpush.bf16.msra.mxu1 %v455_v5  ;;  %311 = vmatpush.bf16.msra.mxu2 %v459_v6 }
  0x1a   :  { %340 = vmatpush.bf16.msra.mxu3 %v463_v10 }
  0x1c   :  { %254 = vmatpush.bf16.msra.mxu0 %v435_v16 }
  0x1d   :  { %283 = vmatpush.bf16.msra.mxu1 %v439_v17  ;;  %312 = vmatpush.bf16.msra.mxu2 %v443_v18 }
  0x1e   :  { %341 = vmatpush.bf16.msra.mxu3 %v447_v22 }
  0x20   :  { %255 = vmatpush.bf16.msra.mxu0 %v419_v28 }
  0x21   :  { %284 = vmatpush.bf16.msra.mxu1 %v423_v29  ;;  %313 = vmatpush.bf16.msra.mxu2 %v427_v30 }
  0x22   :  { %342 = vmatpush.bf16.msra.mxu3 %v431_v31 }
  0x23   :  { %256 = vmatmul.bf16.vlgmr.msra.gmra.mxu0 %v544_v32 }
  0x24   :  { %285 = vmatmul.bf16.vlgmr.msra.gmra.mxu1 %v544_v32  ;;  %314 = vmatmul.bf16.vlgmr.msra.gmra.mxu2 %v544_v32 }
  0x25   :  { %343 = vmatmul.bf16.vlgmr.msra.gmra.mxu3 %v544_v32 }
  0x33   :  { %261 = vmatmul.bf16.gmra.mxu0 %v545_v33 }
  0x34   :  { %290 = vmatmul.bf16.gmra.mxu1 %v545_v33  ;;  %319 = vmatmul.bf16.gmra.mxu2 %v545_v33 }
  0x35   :  { %348 = vmatmul.bf16.gmra.mxu3 %v545_v33 }
  0x43   :  { %266 = vmatmul.bf16.gmra.mxu0 %v546_v34 }
  0x44   :  { %295 = vmatmul.bf16.gmra.mxu1 %v546_v34  ;;  %324 = vmatmul.bf16.gmra.mxu2 %v546_v34 }
  0x45   :  { %353 = vmatmul.bf16.gmra.mxu3 %v546_v34 }
  0x53   :  { %271 = vmatmul.bf16.gmra.mxu0 %v547_v35 }
  0x54   :  { %300 = vmatmul.bf16.gmra.mxu1 %v547_v35  ;;  %329 = vmatmul.bf16.gmra.mxu2 %v547_v35 }
  0x55   :  { %358 = vmatmul.bf16.gmra.mxu3 %v547_v35 }
  0xa0   :  { %v257_v39 = vpop.f32.mrf.mxu0 }
  0xa1   :  { %v258_v40 = vadd.f32 %v257_v39, %v807_v37  ;;  %v286_v41 = vpop.f32.mrf.mxu1 }
  0xa2   :  { %v287_v42 = vadd.f32 %v286_v41, %v809_v38 }
  0xa4   :  { %v364_v43 = vpack.c.bf16 %v287_v42, %v258_v40 }
  0xa6   :  { %380 = vst [vmem:[%s898_s3] sm:$0xff] %v364_v43 }
  0xa7   :  { %v315_v46 = vpop.f32.mrf.mxu2 }
  0xa8   :  { %v316_v47 = vadd.f32 %v315_v46, %v813_v44  ;;  %v344_v48 = vpop.f32.mrf.mxu3  ;;  %v259_v49 = vpop.f32.mrf.mxu0 }
  0xa9   :  { %v345_v50 = vadd.f32 %v344_v48, %v815_v45  ;;  %v260_v51 = vadd.f32 %v259_v49, %v807_v37  ;;  %v288_v52 = vpop.f32.mrf.mxu1 }
  0xaa   :  { %v289_v53 = vadd.f32 %v288_v52, %v809_v38 }
  0xab   :  { %v365_v54 = vpack.c.bf16 %v345_v50, %v316_v47 }
  0xac   :  { %v366_v55 = vpack.c.bf16 %v289_v53, %v260_v51 }
  0xad   :  { %381 = vst [vmem:[%s898_s3 + $0x8] sm:$0xff] %v365_v54 }
  0xae   :  { %382 = vst [vmem:[%s898_s3 + $0x10] sm:$0xff] %v366_v55 }
  0xaf   :  { %v317_v56 = vpop.f32.mrf.mxu2 }
  0xb0   :  { %v318_v57 = vadd.f32 %v317_v56, %v813_v44  ;;  %v346_v58 = vpop.f32.mrf.mxu3  ;;  %v262_v59 = vpop.f32.mrf.mxu0 }
  0xb1   :  { %v347_v60 = vadd.f32 %v346_v58, %v815_v45  ;;  %v263_v61 = vadd.f32 %v262_v59, %v807_v37  ;;  %v291_v62 = vpop.f32.mrf.mxu1 }
  0xb2   :  { %v292_v63 = vadd.f32 %v291_v62, %v809_v38 }
  0xb3   :  { %v367_v0 = vpack.c.bf16 %v347_v60, %v318_v57 }
  0xb4   :  { %v368_v1 = vpack.c.bf16 %v292_v63, %v263_v61 }
  0xb5   :  { %383 = vst [vmem:[%s898_s3 + $0x18] sm:$0xff] %v367_v0 }
  0xb6   :  { %384 = vst [vmem:[%s898_s3 + $0x20] sm:$0xff] %v368_v1 }
  0xb7   :  { %v320_v2 = vpop.f32.mrf.mxu2 }
  0xb8   :  { %v321_v3 = vadd.f32 %v320_v2, %v813_v44  ;;  %v349_v4 = vpop.f32.mrf.mxu3  ;;  %v264_v5 = vpop.f32.mrf.mxu0 }
  0xb9   :  { %v350_v6 = vadd.f32 %v349_v4, %v815_v45  ;;  %v265_v7 = vadd.f32 %v264_v5, %v807_v37  ;;  %v293_v8 = vpop.f32.mrf.mxu1 }
  0xba   :  { %v294_v9 = vadd.f32 %v293_v8, %v809_v38 }
  0xbb   :  { %v369_v10 = vpack.c.bf16 %v350_v6, %v321_v3 }
  0xbc   :  { %v370_v11 = vpack.c.bf16 %v294_v9, %v265_v7 }
  0xbd   :  { %385 = vst [vmem:[%s898_s3 + $0x28] sm:$0xff] %v369_v10 }
  0xbe   :  { %386 = vst [vmem:[%s898_s3 + $0x30] sm:$0xff] %v370_v11 }
  0xbf   :  { %v322_v12 = vpop.f32.mrf.mxu2 }
  0xc0   :  { %v323_v13 = vadd.f32 %v322_v12, %v813_v44  ;;  %v351_v14 = vpop.f32.mrf.mxu3  ;;  %v267_v15 = vpop.f32.mrf.mxu0 }
  0xc1   :  { %v352_v16 = vadd.f32 %v351_v14, %v815_v45  ;;  %v268_v17 = vadd.f32 %v267_v15, %v807_v37  ;;  %v296_v18 = vpop.f32.mrf.mxu1 }
  0xc2   :  { %v297_v19 = vadd.f32 %v296_v18, %v809_v38 }
  0xc3   :  { %v371_v20 = vpack.c.bf16 %v352_v16, %v323_v13 }
  0xc4   :  { %v372_v21 = vpack.c.bf16 %v297_v19, %v268_v17 }
  0xc5   :  { %387 = vst [vmem:[%s898_s3 + $0x38] sm:$0xff] %v371_v20 }
  0xc6   :  { %388 = vst [vmem:[%s898_s3 + $0x40] sm:$0xff] %v372_v21 }
  0xc7   :  { %v325_v22 = vpop.f32.mrf.mxu2 }
  0xc8   :  { %v326_v23 = vadd.f32 %v325_v22, %v813_v44  ;;  %v354_v24 = vpop.f32.mrf.mxu3  ;;  %v269_v25 = vpop.f32.mrf.mxu0 }
  0xc9   :  { %v355_v26 = vadd.f32 %v354_v24, %v815_v45  ;;  %v270_v27 = vadd.f32 %v269_v25, %v807_v37  ;;  %v298_v28 = vpop.f32.mrf.mxu1 }
  0xca   :  { %v299_v29 = vadd.f32 %v298_v28, %v809_v38 }
  0xcb   :  { %v373_v30 = vpack.c.bf16 %v355_v26, %v326_v23 }
  0xcc   :  { %v374_v31 = vpack.c.bf16 %v299_v29, %v270_v27 }
  0xcd   :  { %389 = vst [vmem:[%s898_s3 + $0x48] sm:$0xff] %v373_v30 }
  0xce   :  { %390 = vst [vmem:[%s898_s3 + $0x50] sm:$0xff] %v374_v31 }
  0xcf   :  { %v327_v32 = vpop.f32.mrf.mxu2 }
  0xd0   :  { %v328_v33 = vadd.f32 %v327_v32, %v813_v44  ;;  %v356_v34 = vpop.f32.mrf.mxu3  ;;  %v272_v35 = vpop.f32.mrf.mxu0 }
  0xd1   :  { %v357_v36 = vadd.f32 %v356_v34, %v815_v45  ;;  %v273_v39 = vadd.f32 %v272_v35, %v807_v37  ;;  %v301_v40 = vpop.f32.mrf.mxu1 }
  0xd2   :  { %v302_v41 = vadd.f32 %v301_v40, %v809_v38 }
  0xd3   :  { %v375_v42 = vpack.c.bf16 %v357_v36, %v328_v33 }
  0xd4   :  { %v376_v43 = vpack.c.bf16 %v302_v41, %v273_v39 }
  0xd5   :  { %391 = vst [vmem:[%s898_s3 + $0x58] sm:$0xff] %v375_v42 }
  0xd6   :  { %392 = vst [vmem:[%s898_s3 + $0x60] sm:$0xff] %v376_v43 }
  0xd7   :  { %v330_v46 = vpop.f32.mrf.mxu2 }
  0xd8   :  { %v331_v47 = vadd.f32 %v330_v46, %v813_v44  ;;  %v359_v48 = vpop.f32.mrf.mxu3  ;;  %v274_v49 = vpop.f32.mrf.mxu0 }
  0xd9   :  { %v360_v50 = vadd.f32 %v359_v48, %v815_v45  ;;  %v275_v51 = vadd.f32 %v274_v49, %v807_v37  ;;  %v303_v52 = vpop.f32.mrf.mxu1 }
  0xda   :  { %v304_v53 = vadd.f32 %v303_v52, %v809_v38 }
  0xdb   :  { %v377_v54 = vpack.c.bf16 %v360_v50, %v331_v47 }
  0xdc   :  { %v378_v55 = vpack.c.bf16 %v304_v53, %v275_v51 }
  0xdd   :  { %393 = vst [vmem:[%s898_s3 + $0x68] sm:$0xff] %v377_v54 }
  0xde   :  { %394 = vst [vmem:[%s898_s3 + $0x70] sm:$0xff] %v378_v55 }
  0xdf   :  { %v332_v56 = vpop.f32.mrf.mxu2 }
  0xe0   :  { %v333_v57 = vadd.f32 %v332_v56, %v813_v44  ;;  %v361_v58 = vpop.f32.mrf.mxu3 }
  0xe1   :  { %v362_v59 = vadd.f32 %v361_v58, %v815_v45 }
  0xe3   :  { %v379_v37 = vpack.c.bf16 %v362_v59, %v333_v57 }
  0xe5   :  { %395 = vst [vmem:[%s898_s3 + $0x78] sm:$0xff] %v379_v37 }

// kernel: sentiment_lstm_forward.6
= control target key start
LH: loop header
LB: loop body
LE: loop exit
PB: predicated region body
PF: predicated region fallthrough
CT: control target
= control target key end

     0   :  { %s2259_s3 = inlined_call_operand.vmem [shape: bf16[128,512], index: 3, kind: input, shape index: {}]   ;;  %s2260_s1 = inlined_call_operand.vmem [shape: f32[8,128], index: 1, kind: input, shape index: {}]   ;;  %s2261_s0 = inlined_call_operand.vmem [shape: bf16[8,8,512], index: 0, kind: input, shape index: {}]   ;;  %s2262_s2 = inlined_call_operand.vmem [shape: f32[8,128], index: 2, kind: input, shape index: {}]   ;;  %s2263_s4 = inlined_call_operand.vmem [shape: bf16[8,8,128], index: 4, kind: output, shape index: {0}]   ;;  %s2264_s6 = inlined_call_operand.vmem [shape: f32[8,128], index: 6, kind: output, shape index: {2}]   ;;  %s2265_s5 = inlined_call_operand.vmem [shape: f32[8,128], index: 5, kind: output, shape index: {1}]  }
   0x1   :  { %v1381_v0 = vld [vmem:[%s2259_s3 + $0xe0] sm:$0xf]  ;;  %v1470_v1 = vld [vmem:[%s2259_s3 + $0xec] sm:$0xf0]  ;;  %v1468_v2 = vld [vmem:[%s2259_s3 + $0xe4] sm:$0xf] }
   0x2   :  { %v1644_v3 = vor.u32 %v1470_v1, %v1381_v0  ;;  %v1383_v4 = vld [vmem:[%s2259_s3 + $0xf0] sm:$0xf0]  ;;  %v1469_v5 = vld [vmem:[%s2259_s3 + $0xec] sm:$0xf]  ;;  %v1391_v6 = vld [vmem:[%s2259_s3 + $0xf8] sm:$0xf0] }
   0x3   :  { %v1655_v7 = vor.u32 %v1468_v2, %v1383_v4  ;;  %v1657_v8 = vor.u32 %v1469_v5, %v1391_v6  ;;  %v1365_v9 = vld [vmem:[%s2259_s3 + $0xc0] sm:$0xf]  ;;  %v1466_v10 = vld [vmem:[%s2259_s3 + $0xcc] sm:$0xf0]  ;;  %v1464_v11 = vld [vmem:[%s2259_s3 + $0xc4] sm:$0xf] }
   0x4   :  { %229 = vmatpush.bf16.msra.mxu0 %v1644_v3  ;;  %v1669_v12 = vor.u32 %v1466_v10, %v1365_v9  ;;  %v1367_v13 = vld [vmem:[%s2259_s3 + $0xd0] sm:$0xf0]  ;;  %v1465_v14 = vld [vmem:[%s2259_s3 + $0xcc] sm:$0xf]  ;;  %v1375_v15 = vld [vmem:[%s2259_s3 + $0xd8] sm:$0xf0] }
   0x5   :  { %242 = vmatpush.bf16.msra.mxu1 %v1655_v7  ;;  %268 = vmatpush.bf16.msra.mxu3 %v1657_v8  ;;  %v1682_v16 = vor.u32 %v1464_v11, %v1367_v13  ;;  %v1684_v17 = vor.u32 %v1465_v14, %v1375_v15  ;;  %v1389_v18 = vld [vmem:[%s2259_s3 + $0xe8] sm:$0xf]  ;;  %v1471_v19 = vld [vmem:[%s2259_s3 + $0xf4] sm:$0xf0]  ;;  %v1349_v20 = vld [vmem:[%s2259_s3 + $0xa0] sm:$0xf] }
   0x6   :  { %v1695_v21 = vor.u32 %v1471_v19, %v1389_v18  ;;  %v1462_v22 = vld [vmem:[%s2259_s3 + $0xac] sm:$0xf0]  ;;  %v1460_v23 = vld [vmem:[%s2259_s3 + $0xa4] sm:$0xf]  ;;  %v1351_v24 = vld [vmem:[%s2259_s3 + $0xb0] sm:$0xf0] }
   0x7   :  { %v1461_v25 = vld [vmem:[%s2259_s3 + $0xac] sm:$0xf]  ;;  %v1359_v26 = vld [vmem:[%s2259_s3 + $0xb8] sm:$0xf0]  ;;  %v1373_v27 = vld [vmem:[%s2259_s3 + $0xc8] sm:$0xf]  ;;  %v1717_v28 = vor.u32 %v1462_v22, %v1349_v20  ;;  %v1730_v32 = vor.u32 %v1460_v23, %v1351_v24 }
   0x8   :  { %230 = vmatpush.bf16.msra.mxu0 %v1669_v12  ;;  %255 = vmatpush.bf16.msra.mxu2 %v1695_v21  ;;  %v1467_v29 = vld [vmem:[%s2259_s3 + $0xd4] sm:$0xf0]  ;;  %v1333_v30 = vld [vmem:[%s2259_s3 + $0x80] sm:$0xf]  ;;  %v1458_v31 = vld [vmem:[%s2259_s3 + $0x8c] sm:$0xf0]  ;;  %v1732_v33 = vor.u32 %v1461_v25, %v1359_v26 }
   0x9   :  { %243 = vmatpush.bf16.msra.mxu1 %v1682_v16  ;;  %269 = vmatpush.bf16.msra.mxu3 %v1684_v17  ;;  %v1734_v34 = vor.u32 %v1467_v29, %v1373_v27  ;;  %v1456_v35 = vld [vmem:[%s2259_s3 + $0x84] sm:$0xf]  ;;  %v1335_v36 = vld [vmem:[%s2259_s3 + $0x90] sm:$0xf0]  ;;  %v1457_v37 = vld [vmem:[%s2259_s3 + $0x8c] sm:$0xf]  ;;  %v1756_v41 = vor.u32 %v1458_v31, %v1333_v30 }
   0xa   :  { %v1343_v38 = vld [vmem:[%s2259_s3 + $0x98] sm:$0xf0]  ;;  %v1357_v39 = vld [vmem:[%s2259_s3 + $0xa8] sm:$0xf]  ;;  %v1463_v40 = vld [vmem:[%s2259_s3 + $0xb4] sm:$0xf0]  ;;  %v1768_v45 = vor.u32 %v1456_v35, %v1335_v36 }
   0xb   :  { %v1758_v42 = vor.u32 %v1463_v40, %v1357_v39  ;;  %v1317_v43 = vld [vmem:[%s2259_s3 + $0x60] sm:$0xf]  ;;  %v1454_v44 = vld [vmem:[%s2259_s3 + $0x6c] sm:$0xf0]  ;;  %v1770_v46 = vor.u32 %v1457_v37, %v1343_v38  ;;  %v1452_v47 = vld [vmem:[%s2259_s3 + $0x64] sm:$0xf] }
   0xc   :  { %231 = vmatpush.bf16.msra.mxu0 %v1717_v28  ;;  %256 = vmatpush.bf16.msra.mxu2 %v1734_v34  ;;  %v1341_v48 = vld [vmem:[%s2259_s3 + $0x88] sm:$0xf]  ;;  %v1459_v49 = vld [vmem:[%s2259_s3 + $0x94] sm:$0xf0]  ;;  %v1319_v50 = vld [vmem:[%s2259_s3 + $0x70] sm:$0xf0]  ;;  %v1792_v53 = vor.u32 %v1454_v44, %v1317_v43 }
   0xd   :  { %244 = vmatpush.bf16.msra.mxu1 %v1730_v32  ;;  %270 = vmatpush.bf16.msra.mxu3 %v1732_v33  ;;  %v1453_v51 = vld [vmem:[%s2259_s3 + $0x6c] sm:$0xf]  ;;  %v1327_v52 = vld [vmem:[%s2259_s3 + $0x78] sm:$0xf0]  ;;  %v1794_v54 = vor.u32 %v1459_v49, %v1341_v48  ;;  %v1301_v55 = vld [vmem:[%s2259_s3 + $0x40] sm:$0xf]  ;;  %v1804_v57 = vor.u32 %v1452_v47, %v1319_v50 }
   0xe   :  { %v1450_v56 = vld [vmem:[%s2259_s3 + $0x4c] sm:$0xf0]  ;;  %v1806_v58 = vor.u32 %v1453_v51, %v1327_v52  ;;  %v1448_v59 = vld [vmem:[%s2259_s3 + $0x44] sm:$0xf]  ;;  %v1325_v60 = vld [vmem:[%s2259_s3 + $0x68] sm:$0xf] }
   0xf   :  { %v1455_v61 = vld [vmem:[%s2259_s3 + $0x74] sm:$0xf0]  ;;  %v1303_v62 = vld [vmem:[%s2259_s3 + $0x50] sm:$0xf0]  ;;  %v1449_v63 = vld [vmem:[%s2259_s3 + $0x4c] sm:$0xf]  ;;  %v1828_v1 = vor.u32 %v1450_v56, %v1301_v55 }
  0x10   :  { %232 = vmatpush.bf16.msra.mxu0 %v1756_v41  ;;  %257 = vmatpush.bf16.msra.mxu2 %v1758_v42  ;;  %v1311_v0 = vld [vmem:[%s2259_s3 + $0x58] sm:$0xf0]  ;;  %v1830_v2 = vor.u32 %v1455_v61, %v1325_v60  ;;  %v1285_v4 = vld [vmem:[%s2259_s3 + $0x20] sm:$0xf]  ;;  %v1446_v5 = vld [vmem:[%s2259_s3 + $0x2c] sm:$0xf0]  ;;  %v1840_v6 = vor.u32 %v1448_v59, %v1303_v62 }
  0x11   :  { %245 = vmatpush.bf16.msra.mxu1 %v1768_v45  ;;  %271 = vmatpush.bf16.msra.mxu3 %v1770_v46  ;;  %v1842_v9 = vor.u32 %v1449_v63, %v1311_v0  ;;  %v1444_v10 = vld [vmem:[%s2259_s3 + $0x24] sm:$0xf]  ;;  %v1309_v11 = vld [vmem:[%s2259_s3 + $0x48] sm:$0xf]  ;;  %v1451_v13 = vld [vmem:[%s2259_s3 + $0x54] sm:$0xf0]  ;;  %v1864_v19 = vor.u32 %v1446_v5, %v1285_v4 }
  0x12   :  { %v1287_v14 = vld [vmem:[%s2259_s3 + $0x30] sm:$0xf0]  ;;  %v1445_v15 = vld [vmem:[%s2259_s3 + $0x2c] sm:$0xf]  ;;  %v1295_v18 = vld [vmem:[%s2259_s3 + $0x38] sm:$0xf0]  ;;  %v1866_v20 = vor.u32 %v1451_v13, %v1309_v11 }
  0x13   :  { %v1269_v22 = vld [vmem:[%s2259_s3] sm:$0xf]  ;;  %v1442_v23 = vld [vmem:[%s2259_s3 + $0xc] sm:$0xf0]  ;;  %v1876_v24 = vor.u32 %v1444_v10, %v1287_v14  ;;  %v1878_v25 = vor.u32 %v1445_v15, %v1295_v18  ;;  %v1440_v26 = vld [vmem:[%s2259_s3 + $0x4] sm:$0xf] }
  0x14   :  { %233 = vmatpush.bf16.msra.mxu0 %v1792_v53  ;;  %258 = vmatpush.bf16.msra.mxu2 %v1794_v54  ;;  %v1293_v27 = vld [vmem:[%s2259_s3 + $0x28] sm:$0xf]  ;;  %v1447_v29 = vld [vmem:[%s2259_s3 + $0x34] sm:$0xf0]  ;;  %v1271_v30 = vld [vmem:[%s2259_s3 + $0x10] sm:$0xf0]  ;;  %v1900_v36 = vor.u32 %v1442_v23, %v1269_v22 }
  0x15   :  { %246 = vmatpush.bf16.msra.mxu1 %v1804_v57  ;;  %272 = vmatpush.bf16.msra.mxu3 %v1806_v58  ;;  %v1441_v31 = vld [vmem:[%s2259_s3 + $0xc] sm:$0xf]  ;;  %v1279_v35 = vld [vmem:[%s2259_s3 + $0x18] sm:$0xf0]  ;;  %v24_v37 = vld [vmem:[%s2260_s1] sm:$0xff]  ;;  %v1905_v38 = vor.u32 %v1447_v29, %v1293_v27  ;;  %v1909_v39 = vor.u32 %v1440_v26, %v1271_v30 }
  0x16   :  { %v1911_v40 = vor.u32 %v1441_v31, %v1279_v35  ;;  %v1277_v43 = vld [vmem:[%s2259_s3 + $0x8] sm:$0xf]  ;;  %v1443_v44 = vld [vmem:[%s2259_s3 + $0x14] sm:$0xf0]  ;;  %v68_v47 = vpack.c.bf16 %v24_v37, %v24_v37  ;;  %v62_v49 = vld [vmem:[%s2261_s0] sm:$0xff] }
  0x17   :  { %v1923_v48 = vor.u32 %v1443_v44, %v1277_v43  ;;  %v64_v50 = vunpack.c.l.bf16 %v62_v49  ;;  %v65_v51 = vunpack.c.h.bf16 %v62_v49  ;;  %v63_v59 = vld [vmem:[%s2261_s0 + $0x8] sm:$0xff] }
  0x18   :  { %234 = vmatpush.bf16.msra.mxu0 %v1828_v1  ;;  %259 = vmatpush.bf16.msra.mxu2 %v1830_v2  ;;  %v67_v63 = vunpack.c.h.bf16 %v63_v59  ;;  %v66_v23 = vunpack.c.l.bf16 %v63_v59 }
  0x19   :  { %247 = vmatpush.bf16.msra.mxu1 %v1840_v6  ;;  %273 = vmatpush.bf16.msra.mxu3 %v1842_v9 }
  0x1c   :  { %235 = vmatpush.bf16.msra.mxu0 %v1864_v19  ;;  %260 = vmatpush.bf16.msra.mxu2 %v1866_v20 }
  0x1d   :  { %248 = vmatpush.bf16.msra.mxu1 %v1876_v24  ;;  %274 = vmatpush.bf16.msra.mxu3 %v1878_v25 }
  0x20   :  { %236 = vmatpush.bf16.msra.mxu0 %v1900_v36  ;;  %261 = vmatpush.bf16.msra.mxu2 %v1905_v38 }
  0x21   :  { %249 = vmatpush.bf16.msra.mxu1 %v1909_v39  ;;  %275 = vmatpush.bf16.msra.mxu3 %v1911_v40 }
  0x23   :  { %237 = vmatmul.bf16.vlgmr.msra.gmra.mxu0 %v68_v47 }
  0x24   :  { %357 = vmatpush.bf16.msrb.mxu0 %v1644_v3  ;;  %250 = vmatmul.bf16.vlgmr.msra.gmra.mxu1 %v68_v47 }
  0x25   :  { %370 = vmatpush.bf16.msrb.mxu1 %v1655_v7  ;;  %396 = vmatpush.bf16.msrb.mxu3 %v1657_v8 }
  0x26   :  { %276 = vmatmul.bf16.vlgmr.msra.gmra.mxu3 %v68_v47  ;;  %262 = vmatpush.bf16.msra.mxu2 %v1923_v48 }
  0x28   :  { %358 = vmatpush.bf16.msrb.mxu0 %v1669_v12 }
  0x29   :  { %371 = vmatpush.bf16.msrb.mxu1 %v1682_v16  ;;  %397 = vmatpush.bf16.msrb.mxu3 %v1684_v17 }
  0x2a   :  { %383 = vmatpush.bf16.msrb.mxu2 %v1695_v21 }
  0x2b   :  { %263 = vmatmul.bf16.vlgmr.msra.gmra.mxu2 %v68_v47 }
  0x2c   :  { %359 = vmatpush.bf16.msrb.mxu0 %v1717_v28 }
  0x2d   :  { %372 = vmatpush.bf16.msrb.mxu1 %v1730_v32  ;;  %398 = vmatpush.bf16.msrb.mxu3 %v1732_v33 }
  0x2e   :  { %384 = vmatpush.bf16.msrb.mxu2 %v1734_v34 }
  0x30   :  { %360 = vmatpush.bf16.msrb.mxu0 %v1756_v41 }
  0x31   :  { %373 = vmatpush.bf16.msrb.mxu1 %v1768_v45  ;;  %399 = vmatpush.bf16.msrb.mxu3 %v1770_v46 }
  0x32   :  { %385 = vmatpush.bf16.msrb.mxu2 %v1758_v42 }
  0x34   :  { %361 = vmatpush.bf16.msrb.mxu0 %v1792_v53 }
  0x35   :  { %374 = vmatpush.bf16.msrb.mxu1 %v1804_v57  ;;  %400 = vmatpush.bf16.msrb.mxu3 %v1806_v58 }
  0x36   :  { %386 = vmatpush.bf16.msrb.mxu2 %v1794_v54 }
  0x38   :  { %362 = vmatpush.bf16.msrb.mxu0 %v1828_v1 }
  0x39   :  { %375 = vmatpush.bf16.msrb.mxu1 %v1840_v6  ;;  %401 = vmatpush.bf16.msrb.mxu3 %v1842_v9 }
  0x3a   :  { %387 = vmatpush.bf16.msrb.mxu2 %v1830_v2 }
  0x3c   :  { %363 = vmatpush.bf16.msrb.mxu0 %v1864_v19 }
  0x3d   :  { %376 = vmatpush.bf16.msrb.mxu1 %v1876_v24  ;;  %402 = vmatpush.bf16.msrb.mxu3 %v1878_v25 }
  0x3e   :  { %388 = vmatpush.bf16.msrb.mxu2 %v1866_v20 }
  0x40   :  { %364 = vmatpush.bf16.msrb.mxu0 %v1900_v36 }
  0x41   :  { %377 = vmatpush.bf16.msrb.mxu1 %v1909_v39  ;;  %403 = vmatpush.bf16.msrb.mxu3 %v1911_v40 }
  0x42   :  { %389 = vmatpush.bf16.msrb.mxu2 %v1905_v38 }
  0x44   :  { %486 = vmatpush.bf16.msra.mxu0 %v1644_v3 }
  0x45   :  { %499 = vmatpush.bf16.msra.mxu1 %v1655_v7  ;;  %525 = vmatpush.bf16.msra.mxu3 %v1657_v8 }
  0x46   :  { %390 = vmatpush.bf16.msrb.mxu2 %v1923_v48 }
  0x48   :  { %487 = vmatpush.bf16.msra.mxu0 %v1669_v12 }
  0x49   :  { %500 = vmatpush.bf16.msra.mxu1 %v1682_v16  ;;  %526 = vmatpush.bf16.msra.mxu3 %v1684_v17 }
  0x4a   :  { %512 = vmatpush.bf16.msra.mxu2 %v1695_v21 }
  0x4c   :  { %488 = vmatpush.bf16.msra.mxu0 %v1717_v28 }
  0x4d   :  { %501 = vmatpush.bf16.msra.mxu1 %v1730_v32  ;;  %527 = vmatpush.bf16.msra.mxu3 %v1732_v33 }
  0x4e   :  { %513 = vmatpush.bf16.msra.mxu2 %v1734_v34 }
  0x50   :  { %489 = vmatpush.bf16.msra.mxu0 %v1756_v41 }
  0x51   :  { %502 = vmatpush.bf16.msra.mxu1 %v1768_v45  ;;  %528 = vmatpush.bf16.msra.mxu3 %v1770_v46 }
  0x52   :  { %514 = vmatpush.bf16.msra.mxu2 %v1758_v42 }
  0x54   :  { %490 = vmatpush.bf16.msra.mxu0 %v1792_v53 }
  0x55   :  { %503 = vmatpush.bf16.msra.mxu1 %v1804_v57  ;;  %529 = vmatpush.bf16.msra.mxu3 %v1806_v58 }
  0x56   :  { %515 = vmatpush.bf16.msra.mxu2 %v1794_v54 }
  0x58   :  { %491 = vmatpush.bf16.msra.mxu0 %v1828_v1 }
  0x59   :  { %504 = vmatpush.bf16.msra.mxu1 %v1840_v6  ;;  %530 = vmatpush.bf16.msra.mxu3 %v1842_v9 }
  0x5a   :  { %516 = vmatpush.bf16.msra.mxu2 %v1830_v2 }
  0x5c   :  { %492 = vmatpush.bf16.msra.mxu0 %v1864_v19 }
  0x5d   :  { %505 = vmatpush.bf16.msra.mxu1 %v1876_v24  ;;  %531 = vmatpush.bf16.msra.mxu3 %v1878_v25 }
  0x5e   :  { %517 = vmatpush.bf16.msra.mxu2 %v1866_v20 }
  0x60   :  { %493 = vmatpush.bf16.msra.mxu0 %v1900_v36 }
  0x61   :  { %506 = vmatpush.bf16.msra.mxu1 %v1909_v39  ;;  %532 = vmatpush.bf16.msra.mxu3 %v1911_v40 }
  0x62   :  { %518 = vmatpush.bf16.msra.mxu2 %v1905_v38 }
  0x66   :  { %519 = vmatpush.bf16.msra.mxu2 %v1923_v48 }
  0xa0   :  { %v238_v52 = vpop.f32.mrf.mxu0 }
  0xa1   :  { %v281_v55 = vadd.f32 %v238_v52, %v64_v50  ;;  %v251_v56 = vpop.f32.mrf.mxu1 }
  0xa2   :  { %v282_v60 = vadd.f32 %v251_v56, %v65_v51 }
  0xa3   :  { %v1395_v61 = vmul.f32 -1.442695, %v281_v55 }
  0xa4   :  { %v1396_v62 = vmul.f32 -1.442695, %v282_v60 }
  0xa5   :  { %1472 = vpow2.f32 %v1395_v61 }
  0xa6   :  { %1474 = vpow2.f32 %v1396_v62 }
  0xa8   :  { %v240_v5 = vpop.f32.mrf.mxu0 }
  0xa9   :  { %v277_v0 = vpop.f32.mrf.mxu3  ;;  %v253_v10 = vpop.f32.mrf.mxu1 }
  0xaa   :  { %v284_v4 = vadd.f32 %v277_v0, %v67_v63  ;;  %v26_v10 = vld [vmem:[%s2262_s2] sm:$0xff] }
  0xab   :  { %v1473_v13 = vpop.eup %1472 }
  0xac   :  { %v1397_v11 = vmul.f32 -1.442695, %v284_v4  ;;  %v1475_v15 = vpop.eup %1474  ;;  %v288_v18 = vadd.f32 1.0, %v1473_v13 }
  0xad   :  { %v307_v22 = vadd.f32 1.0, %v1475_v15 }
  0xae   :  { %v264_v14 = vpop.f32.mrf.mxu2  ;;  %1476 = vpow2.f32 %v1397_v11  ;;  %v300_v50 = vand.u32 2147483648, %v288_v18  ;;  %v298_v55 = vand.u32 2147483647, %v288_v18  ;;  %vm294_vm2 = vweird.f32 %v288_v18 }
  0xaf   :  { %1478 = vrcp.f32 %v288_v18  ;;  %v283_v29 = vadd.f32 %v264_v14, %v66_v23  ;;  %v319_v51 = vand.u32 2147483648, %v307_v22  ;;  %v317_v59 = vand.u32 2147483647, %v307_v22 }
  0xb0   :  { %1480 = vrcp.f32 %v307_v22  ;;  %vm313_vm3 = vweird.f32 %v307_v22  ;;  %v301_v0 = vor.u32 1.1754944e-38, %v300_v50  ;;  %vm299_vm6 = vcmp.eq.f32.partialorder %v298_v55, 8.507059e+37 }
  0xb1   :  { %v279_v26 = vpop.f32.mrf.mxu3  ;;  %v320_v5 = vor.u32 1.1754944e-38, %v319_v51  ;;  %vm318_vm7 = vcmp.eq.f32.partialorder %v317_v59, 8.507059e+37 }
  0xb4   :  { %v1477_v27 = vpop.eup %1476 }
  0xb5   :  { %v327_v30 = vadd.f32 1.0, %v1477_v27  ;;  %v1479_v35 = vpop.eup %1478 }
  0xb6   :  { %v266_v31 = vpop.f32.mrf.mxu2  ;;  %v1481_v37 = vpop.eup %1480  ;;  %v290_v43 = vmul.f32 %v1479_v35, %v288_v18  ;;  %vm295_vm0 = vweird.f32 %v1479_v35 }
  0xb7   :  { %1482 = vrcp.f32 %v327_v30  ;;  %v309_v44 = vmul.f32 %v1481_v37, %v307_v22  ;;  %vm314_vm1 = vweird.f32 %v1481_v37  ;;  %vm296_vm4 = vmor %vm294_vm2, %vm295_vm0  ;;  %v339_v31 = vand.u32 2147483648, %v327_v30 }
  0xb8   :  { %1484 = vtanh.f32 %v283_v29  ;;  %v291_v47 = vsub.f32 1.0, %v290_v43  ;;  %vm315_vm5 = vmor %vm313_vm3, %vm314_vm1  ;;  %vm333_vm9 = vweird.f32 %v327_v30  ;;  %v337_v43 = vand.u32 2147483647, %v327_v30 }
  0xb9   :  { %v310_v49 = vsub.f32 1.0, %v309_v44  ;;  %v340_v44 = vor.u32 1.1754944e-38, %v339_v31 }
  0xba   :  { %v292_v52 = vmul.f32 %v1479_v35, %v291_v47  ;;  %vm338_vm11 = vcmp.eq.f32.partialorder %v337_v43, 8.507059e+37 }
  0xbb   :  { %v311_v56 = vmul.f32 %v1481_v37, %v310_v49 }
  0xbc   :  { %v293_v61 = vadd.f32 %v1479_v35, %v292_v52 }
  0xbd   :  { %v1483_v60 = vpop.eup %1482  ;;  %v312_v4 = vadd.f32 %v1481_v37, %v311_v56 }
  0xbe   :  { %v1485_v62 = vpop.eup %1484  ;;  %v329_v63 = vmul.f32 %v1483_v60, %v327_v30  ;;  %v297_v11 = vsel %vm296_vm4, %v1479_v35, %v293_v61  ;;  %vm334_vm8 = vweird.f32 %v1483_v60  ;;  %v1398_v30 = vld [vmem:[%s2261_s0 + $0x10] sm:$0xff]  ;;  %v1399_v61 = vld [vmem:[%s2261_s0 + $0x18] sm:$0xff] }
  0xbf   :  { %v302_v14 = vsel %vm299_vm6, %v301_v0, %v297_v11  ;;  %v316_v15 = vsel %vm315_vm5, %v1481_v37, %v312_v4  ;;  %vm335_vm10 = vmor %vm333_vm9, %vm334_vm8  ;;  %v353_v51 = vunpack.c.l.bf16 %v1398_v30  ;;  %v354_v52 = vunpack.c.h.bf16 %v1398_v30 }
  0xc0   :  { %v330_v13 = vsub.f32 1.0, %v329_v63  ;;  %v321_v23 = vsel %vm318_vm7, %v320_v5, %v316_v15  ;;  %v344_v18 = vmul.f32 %v1485_v62, %v302_v14  ;;  %v356_v0 = vunpack.c.h.bf16 %v1399_v61 }
  0xc1   :  { %v343_v22 = vmul.f32 %v321_v23, %v26_v10  ;;  %v355_v31 = vunpack.c.l.bf16 %v1399_v61 }
  0xc2   :  { %v331_v26 = vmul.f32 %v1483_v60, %v330_v13 }
  0xc3   :  { %v1999_v27 = vadd.f32 %v344_v18, %v343_v22 }
  0xc4   :  { %v332_v29 = vadd.f32 %v1483_v60, %v331_v26 }
  0xc5   :  { %1486 = vtanh.f32 %v1999_v27 }
  0xc6   :  { %v336_v35 = vsel %vm335_vm10, %v1483_v60, %v332_v29 }
  0xc7   :  { %v341_v37 = vsel %vm338_vm11, %v340_v44, %v336_v35 }
  0xcb   :  { %v1487_v47 = vpop.eup %1486 }
  0xcc   :  { %v347_v49 = vmul.f32 %v1487_v47, %v341_v37 }
  0xce   :  { %v348_v50 = vpack.c.bf16 %v347_v49, %v347_v49 }
  0xd0   :  { %349 = vst [vmem:[%s2263_s4] sm:$0xf] %v348_v50  ;;  %365 = vmatmul.bf16.vlgmr.msrb.gmra.mxu0 %v348_v50  ;;  %378 = vmatmul.bf16.vlgmr.msrb.gmra.mxu1 %v348_v50 }
  0xd1   :  { %391 = vmatmul.bf16.vlgmr.msrb.gmra.mxu2 %v348_v50  ;;  %404 = vmatmul.bf16.vlgmr.msrb.gmra.mxu3 %v348_v50 }
  0xd2   :  { %615 = vmatpush.bf16.msrb.mxu0 %v1644_v3  ;;  %628 = vmatpush.bf16.msrb.mxu1 %v1655_v7 }
  0xd3   :  { %641 = vmatpush.bf16.msrb.mxu2 %v1695_v21  ;;  %654 = vmatpush.bf16.msrb.mxu3 %v1657_v8 }
  0xd6   :  { %616 = vmatpush.bf16.msrb.mxu0 %v1669_v12  ;;  %629 = vmatpush.bf16.msrb.mxu1 %v1682_v16 }
  0xd7   :  { %642 = vmatpush.bf16.msrb.mxu2 %v1734_v34  ;;  %655 = vmatpush.bf16.msrb.mxu3 %v1684_v17 }
  0xda   :  { %617 = vmatpush.bf16.msrb.mxu0 %v1717_v28  ;;  %630 = vmatpush.bf16.msrb.mxu1 %v1730_v32 }
  0xdb   :  { %643 = vmatpush.bf16.msrb.mxu2 %v1758_v42  ;;  %656 = vmatpush.bf16.msrb.mxu3 %v1732_v33 }
  0xde   :  { %618 = vmatpush.bf16.msrb.mxu0 %v1756_v41  ;;  %631 = vmatpush.bf16.msrb.mxu1 %v1768_v45 }
  0xdf   :  { %644 = vmatpush.bf16.msrb.mxu2 %v1794_v54  ;;  %657 = vmatpush.bf16.msrb.mxu3 %v1770_v46 }
  0xe2   :  { %619 = vmatpush.bf16.msrb.mxu0 %v1792_v53  ;;  %632 = vmatpush.bf16.msrb.mxu1 %v1804_v57 }
  0xe3   :  { %645 = vmatpush.bf16.msrb.mxu2 %v1830_v2  ;;  %658 = vmatpush.bf16.msrb.mxu3 %v1806_v58 }
  0xe6   :  { %620 = vmatpush.bf16.msrb.mxu0 %v1828_v1  ;;  %633 = vmatpush.bf16.msrb.mxu1 %v1840_v6 }
  0xe7   :  { %646 = vmatpush.bf16.msrb.mxu2 %v1866_v20  ;;  %659 = vmatpush.bf16.msrb.mxu3 %v1842_v9 }
  0xea   :  { %621 = vmatpush.bf16.msrb.mxu0 %v1864_v19  ;;  %634 = vmatpush.bf16.msrb.mxu1 %v1876_v24 }
  0xeb   :  { %647 = vmatpush.bf16.msrb.mxu2 %v1905_v38  ;;  %660 = vmatpush.bf16.msrb.mxu3 %v1878_v25 }
  0xee   :  { %622 = vmatpush.bf16.msrb.mxu0 %v1900_v36  ;;  %635 = vmatpush.bf16.msrb.mxu1 %v1909_v39 }
  0xef   :  { %648 = vmatpush.bf16.msrb.mxu2 %v1923_v48  ;;  %661 = vmatpush.bf16.msrb.mxu3 %v1911_v40 }
 0x14d   :  { %v366_v55 = vpop.f32.mrf.mxu0  ;;  %v379_v56 = vpop.f32.mrf.mxu1 }
 0x14e   :  { %v409_v59 = vadd.f32 %v366_v55, %v353_v51  ;;  %v410_v60 = vadd.f32 %v379_v56, %v354_v52 }
 0x150   :  { %v1400_v62 = vmul.f32 -1.442695, %v409_v59  ;;  %v1401_v63 = vmul.f32 -1.442695, %v410_v60 }
 0x152   :  { %1488 = vpow2.f32 %v1400_v62 }
 0x153   :  { %1490 = vpow2.f32 %v1401_v63 }
 0x154   :  { %v392_v4 = vpop.f32.mrf.mxu2  ;;  %v405_v5 = vpop.f32.mrf.mxu3 }
 0x155   :  { %v412_v10 = vadd.f32 %v405_v5, %v356_v0  ;;  %v368_v11 = vpop.f32.mrf.mxu0  ;;  %v381_v13 = vpop.f32.mrf.mxu1  ;;  %v411_v47 = vadd.f32 %v392_v4, %v355_v31 }
 0x157   :  { %v1402_v14 = vmul.f32 -1.442695, %v412_v10 }
 0x158   :  { %v1489_v15 = vpop.eup %1488 }
 0x159   :  { %v1491_v23 = vpop.eup %1490  ;;  %v416_v18 = vadd.f32 1.0, %v1489_v15  ;;  %1492 = vpow2.f32 %v1402_v14 }
 0x15a   :  { %v435_v26 = vadd.f32 1.0, %v1491_v23 }
 0x15b   :  { %1494 = vrcp.f32 %v416_v18  ;;  %v428_v52 = vand.u32 2147483648, %v416_v18  ;;  %v426_v59 = vand.u32 2147483647, %v416_v18  ;;  %vm422_vm14 = vweird.f32 %v416_v18 }
 0x15c   :  { %1496 = vrcp.f32 %v435_v26  ;;  %v394_v22 = vpop.f32.mrf.mxu2  ;;  %v407_v29 = vpop.f32.mrf.mxu3  ;;  %v447_v55 = vand.u32 2147483648, %v435_v26  ;;  %v445_v62 = vand.u32 2147483647, %v435_v26  ;;  %vm441_vm15 = vweird.f32 %v435_v26 }
 0x15d   :  { %v429_v0 = vor.u32 1.1754944e-38, %v428_v52  ;;  %vm427_vm2 = vcmp.eq.f32.partialorder %v426_v59, 8.507059e+37 }
 0x15e   :  { %v448_v10 = vor.u32 1.1754944e-38, %v447_v55  ;;  %vm446_vm3 = vcmp.eq.f32.partialorder %v445_v62, 8.507059e+37 }
 0x15f   :  { %v1493_v43 = vpop.eup %1492 }
 0x160   :  { %v455_v35 = vadd.f32 1.0, %v1493_v43 }
 0x161   :  { %v1495_v44 = vpop.eup %1494 }
 0x162   :  { %v1497_v37 = vpop.eup %1496  ;;  %v418_v49 = vmul.f32 %v1495_v44, %v416_v18  ;;  %1498 = vrcp.f32 %v455_v35  ;;  %vm423_vm12 = vweird.f32 %v1495_v44  ;;  %vm461_vm5 = vweird.f32 %v455_v35 }
 0x163   :  { %v437_v50 = vmul.f32 %v1497_v37, %v435_v26  ;;  %1500 = vtanh.f32 %v411_v47  ;;  %vm442_vm13 = vweird.f32 %v1497_v37  ;;  %vm424_vm0 = vmor %vm422_vm14, %vm423_vm12  ;;  %v467_v47 = vand.u32 2147483648, %v455_v35 }
 0x164   :  { %v419_v30 = vsub.f32 1.0, %v418_v49  ;;  %vm443_vm1 = vmor %vm441_vm15, %vm442_vm13 }
 0x165   :  { %v438_v51 = vsub.f32 1.0, %v437_v50  ;;  %v468_v50 = vor.u32 1.1754944e-38, %v467_v47 }
 0x166   :  { %v420_v56 = vmul.f32 %v1495_v44, %v419_v30 }
 0x167   :  { %v439_v60 = vmul.f32 %v1497_v37, %v438_v51 }
 0x168   :  { %v1499_v61 = vpop.eup %1498  ;;  %v421_v63 = vadd.f32 %v1495_v44, %v420_v56 }
 0x169   :  { %v440_v4 = vadd.f32 %v1497_v37, %v439_v60  ;;  %v457_v5 = vmul.f32 %v1499_v61, %v455_v35  ;;  %v1501_v13 = vpop.eup %1500  ;;  %vm462_vm4 = vweird.f32 %v1499_v61 }
 0x16a   :  { %v425_v11 = vsel %vm424_vm0, %v1495_v44, %v421_v63  ;;  %v465_v44 = vand.u32 2147483647, %v455_v35  ;;  %vm463_vm6 = vmor %vm461_vm5, %vm462_vm4 }
 0x16b   :  { %v430_v14 = vsel %vm427_vm2, %v429_v0, %v425_v11  ;;  %v444_v15 = vsel %vm443_vm1, %v1497_v37, %v440_v4  ;;  %v458_v23 = vsub.f32 1.0, %v457_v5 }
 0x16c   :  { %v449_v22 = vsel %vm446_vm3, %v448_v10, %v444_v15  ;;  %v472_v29 = vmul.f32 %v1501_v13, %v430_v14  ;;  %vm466_vm7 = vcmp.eq.f32.partialorder %v465_v44, 8.507059e+37 }
 0x16d   :  { %v471_v31 = vmul.f32 %v449_v22, %v1999_v27  ;;  %v459_v43 = vmul.f32 %v1499_v61, %v458_v23  ;;  %v1404_v27 = vld [vmem:[%s2261_s0 + $0x20] sm:$0xff] }
 0x16e   :  { %v482_v35 = vunpack.c.l.bf16 %v1404_v27  ;;  %v483_v55 = vunpack.c.h.bf16 %v1404_v27 }
 0x16f   :  { %v2044_v18 = vadd.f32 %v472_v29, %v471_v31  ;;  %v460_v26 = vadd.f32 %v1499_v61, %v459_v43 }
 0x171   :  { %1502 = vtanh.f32 %v2044_v18  ;;  %v464_v49 = vsel %vm463_vm6, %v1499_v61, %v460_v26  ;;  %v1405_v61 = vld [vmem:[%s2261_s0 + $0x28] sm:$0xff] }
 0x172   :  { %v469_v30 = vsel %vm466_vm7, %v468_v50, %v464_v49  ;;  %v485_v4 = vunpack.c.h.bf16 %v1405_v61  ;;  %v484_v47 = vunpack.c.l.bf16 %v1405_v61 }
 0x177   :  { %v1503_v37 = vpop.eup %1502 }
 0x178   :  { %v475_v51 = vmul.f32 %v1503_v37, %v469_v30 }
 0x17a   :  { %v476_v52 = vpack.c.bf16 %v475_v51, %v475_v51 }
 0x17c   :  { %1403 = vst [vmem:[%s2263_s4 + $0x4] sm:$0xf] %v476_v52  ;;  %494 = vmatmul.bf16.vlgmr.msra.gmra.mxu0 %v476_v52  ;;  %507 = vmatmul.bf16.vlgmr.msra.gmra.mxu1 %v476_v52 }
 0x17d   :  { %520 = vmatmul.bf16.vlgmr.msra.gmra.mxu2 %v476_v52  ;;  %533 = vmatmul.bf16.vlgmr.msra.gmra.mxu3 %v476_v52 }
 0x17e   :  { %744 = vmatpush.bf16.msra.mxu0 %v1644_v3  ;;  %757 = vmatpush.bf16.msra.mxu1 %v1655_v7 }
 0x17f   :  { %770 = vmatpush.bf16.msra.mxu2 %v1695_v21  ;;  %783 = vmatpush.bf16.msra.mxu3 %v1657_v8 }
 0x182   :  { %745 = vmatpush.bf16.msra.mxu0 %v1669_v12  ;;  %758 = vmatpush.bf16.msra.mxu1 %v1682_v16 }
 0x183   :  { %771 = vmatpush.bf16.msra.mxu2 %v1734_v34  ;;  %784 = vmatpush.bf16.msra.mxu3 %v1684_v17 }
 0x186   :  { %746 = vmatpush.bf16.msra.mxu0 %v1717_v28  ;;  %759 = vmatpush.bf16.msra.mxu1 %v1730_v32 }
 0x187   :  { %772 = vmatpush.bf16.msra.mxu2 %v1758_v42  ;;  %785 = vmatpush.bf16.msra.mxu3 %v1732_v33 }
 0x18a   :  { %747 = vmatpush.bf16.msra.mxu0 %v1756_v41  ;;  %760 = vmatpush.bf16.msra.mxu1 %v1768_v45 }
 0x18b   :  { %773 = vmatpush.bf16.msra.mxu2 %v1794_v54  ;;  %786 = vmatpush.bf16.msra.mxu3 %v1770_v46 }
 0x18e   :  { %748 = vmatpush.bf16.msra.mxu0 %v1792_v53  ;;  %761 = vmatpush.bf16.msra.mxu1 %v1804_v57 }
 0x18f   :  { %774 = vmatpush.bf16.msra.mxu2 %v1830_v2  ;;  %787 = vmatpush.bf16.msra.mxu3 %v1806_v58 }
 0x192   :  { %749 = vmatpush.bf16.msra.mxu0 %v1828_v1  ;;  %762 = vmatpush.bf16.msra.mxu1 %v1840_v6 }
 0x193   :  { %775 = vmatpush.bf16.msra.mxu2 %v1866_v20  ;;  %788 = vmatpush.bf16.msra.mxu3 %v1842_v9 }
 0x196   :  { %750 = vmatpush.bf16.msra.mxu0 %v1864_v19  ;;  %763 = vmatpush.bf16.msra.mxu1 %v1876_v24 }
 0x197   :  { %776 = vmatpush.bf16.msra.mxu2 %v1905_v38  ;;  %789 = vmatpush.bf16.msra.mxu3 %v1878_v25 }
 0x19a   :  { %751 = vmatpush.bf16.msra.mxu0 %v1900_v36  ;;  %764 = vmatpush.bf16.msra.mxu1 %v1909_v39 }
 0x19b   :  { %777 = vmatpush.bf16.msra.mxu2 %v1923_v48  ;;  %790 = vmatpush.bf16.msra.mxu3 %v1911_v40 }
 0x1f9   :  { %v495_v56 = vpop.f32.mrf.mxu0  ;;  %v508_v59 = vpop.f32.mrf.mxu1 }
 0x1fa   :  { %v538_v60 = vadd.f32 %v495_v56, %v482_v35  ;;  %v539_v62 = vadd.f32 %v508_v59, %v483_v55 }
 0x1fc   :  { %v1406_v63 = vmul.f32 -1.442695, %v538_v60  ;;  %v1407_v0 = vmul.f32 -1.442695, %v539_v62 }
 0x1fe   :  { %1504 = vpow2.f32 %v1406_v63 }
 0x1ff   :  { %1506 = vpow2.f32 %v1407_v0 }
 0x200   :  { %v521_v5 = vpop.f32.mrf.mxu2  ;;  %v534_v10 = vpop.f32.mrf.mxu3 }
 0x201   :  { %v541_v11 = vadd.f32 %v534_v10, %v485_v4  ;;  %v497_v13 = vpop.f32.mrf.mxu0  ;;  %v510_v14 = vpop.f32.mrf.mxu1  ;;  %v540_v37 = vadd.f32 %v521_v5, %v484_v47 }
 0x203   :  { %v1408_v15 = vmul.f32 -1.442695, %v541_v11 }
 0x204   :  { %v1505_v23 = vpop.eup %1504 }
 0x205   :  { %v1507_v22 = vpop.eup %1506  ;;  %v545_v29 = vadd.f32 1.0, %v1505_v23  ;;  %1508 = vpow2.f32 %v1408_v15 }
 0x206   :  { %v564_v31 = vadd.f32 1.0, %v1507_v22 }
 0x207   :  { %1510 = vrcp.f32 %v545_v29  ;;  %v557_v55 = vand.u32 2147483648, %v545_v29  ;;  %v555_v60 = vand.u32 2147483647, %v545_v29  ;;  %vm551_vm10 = vweird.f32 %v545_v29 }
 0x208   :  { %1512 = vrcp.f32 %v564_v31  ;;  %v523_v43 = vpop.f32.mrf.mxu2  ;;  %v536_v26 = vpop.f32.mrf.mxu3  ;;  %v576_v56 = vand.u32 2147483648, %v564_v31  ;;  %v574_v63 = vand.u32 2147483647, %v564_v31  ;;  %vm570_vm11 = vweird.f32 %v564_v31 }
 0x209   :  { %v558_v4 = vor.u32 1.1754944e-38, %v557_v55  ;;  %vm556_vm14 = vcmp.eq.f32.partialorder %v555_v60, 8.507059e+37 }
 0x20a   :  { %v577_v11 = vor.u32 1.1754944e-38, %v576_v56  ;;  %vm575_vm15 = vcmp.eq.f32.partialorder %v574_v63, 8.507059e+37 }
 0x20b   :  { %v1509_v44 = vpop.eup %1508 }
 0x20c   :  { %v584_v49 = vadd.f32 1.0, %v1509_v44 }
 0x20d   :  { %v1511_v50 = vpop.eup %1510 }
 0x20e   :  { %v1513_v30 = vpop.eup %1512  ;;  %v547_v51 = vmul.f32 %v1511_v50, %v545_v29  ;;  %1514 = vrcp.f32 %v584_v49  ;;  %vm552_vm8 = vweird.f32 %v1511_v50  ;;  %vm590_vm1 = vweird.f32 %v584_v49 }
 0x20f   :  { %v566_v52 = vmul.f32 %v1513_v30, %v564_v31  ;;  %1516 = vtanh.f32 %v540_v37  ;;  %vm571_vm9 = vweird.f32 %v1513_v30  ;;  %vm553_vm12 = vmor %vm551_vm10, %vm552_vm8  ;;  %v596_v37 = vand.u32 2147483648, %v584_v49 }
 0x210   :  { %v548_v27 = vsub.f32 1.0, %v547_v51  ;;  %vm572_vm13 = vmor %vm570_vm11, %vm571_vm9 }
 0x211   :  { %v567_v35 = vsub.f32 1.0, %v566_v52  ;;  %v597_v52 = vor.u32 1.1754944e-38, %v596_v37 }
 0x212   :  { %v549_v59 = vmul.f32 %v1511_v50, %v548_v27 }
 0x213   :  { %v568_v62 = vmul.f32 %v1513_v30, %v567_v35 }
 0x214   :  { %v1515_v61 = vpop.eup %1514  ;;  %v550_v0 = vadd.f32 %v1511_v50, %v549_v59 }
 0x215   :  { %v569_v5 = vadd.f32 %v1513_v30, %v568_v62  ;;  %v586_v10 = vmul.f32 %v1515_v61, %v584_v49  ;;  %v1517_v14 = vpop.eup %1516  ;;  %vm591_vm0 = vweird.f32 %v1515_v61 }
 0x216   :  { %v554_v13 = vsel %vm553_vm12, %v1511_v50, %v550_v0  ;;  %v594_v50 = vand.u32 2147483647, %v584_v49  ;;  %vm592_vm2 = vmor %vm590_vm1, %vm591_vm0 }
 0x217   :  { %v559_v15 = vsel %vm556_vm14, %v558_v4, %v554_v13  ;;  %v573_v23 = vsel %vm572_vm13, %v1513_v30, %v569_v5  ;;  %v587_v22 = vsub.f32 1.0, %v586_v10 }
 0x218   :  { %v578_v43 = vsel %vm575_vm15, %v577_v11, %v573_v23  ;;  %v601_v26 = vmul.f32 %v1517_v14, %v559_v15  ;;  %vm595_vm3 = vcmp.eq.f32.partialorder %v594_v50, 8.507059e+37 }
 0x219   :  { %v600_v47 = vmul.f32 %v578_v43, %v2044_v18  ;;  %v588_v44 = vmul.f32 %v1515_v61, %v587_v22  ;;  %v1410_v18 = vld [vmem:[%s2261_s0 + $0x30] sm:$0xff] }
 0x21a   :  { %v611_v49 = vunpack.c.l.bf16 %v1410_v18  ;;  %v612_v56 = vunpack.c.h.bf16 %v1410_v18 }
 0x21b   :  { %v2089_v29 = vadd.f32 %v601_v26, %v600_v47  ;;  %v589_v31 = vadd.f32 %v1515_v61, %v588_v44 }
 0x21d   :  { %1518 = vtanh.f32 %v2089_v29  ;;  %v593_v51 = vsel %vm592_vm2, %v1515_v61, %v589_v31  ;;  %v1411_v61 = vld [vmem:[%s2261_s0 + $0x38] sm:$0xff] }
 0x21e   :  { %v598_v27 = vsel %vm595_vm3, %v597_v52, %v593_v51  ;;  %v614_v5 = vunpack.c.h.bf16 %v1411_v61  ;;  %v613_v37 = vunpack.c.l.bf16 %v1411_v61 }
 0x223   :  { %v1519_v30 = vpop.eup %1518 }
 0x224   :  { %v604_v35 = vmul.f32 %v1519_v30, %v598_v27 }
 0x226   :  { %v605_v55 = vpack.c.bf16 %v604_v35, %v604_v35 }
 0x228   :  { %1409 = vst [vmem:[%s2263_s4 + $0x8] sm:$0xf] %v605_v55  ;;  %623 = vmatmul.bf16.vlgmr.msrb.gmra.mxu0 %v605_v55  ;;  %636 = vmatmul.bf16.vlgmr.msrb.gmra.mxu1 %v605_v55 }
 0x229   :  { %649 = vmatmul.bf16.vlgmr.msrb.gmra.mxu2 %v605_v55  ;;  %662 = vmatmul.bf16.vlgmr.msrb.gmra.mxu3 %v605_v55 }
 0x22a   :  { %873 = vmatpush.bf16.msrb.mxu0 %v1644_v3  ;;  %886 = vmatpush.bf16.msrb.mxu1 %v1655_v7 }
 0x22b   :  { %899 = vmatpush.bf16.msrb.mxu2 %v1695_v21  ;;  %912 = vmatpush.bf16.msrb.mxu3 %v1657_v8 }
 0x22e   :  { %874 = vmatpush.bf16.msrb.mxu0 %v1669_v12  ;;  %887 = vmatpush.bf16.msrb.mxu1 %v1682_v16 }
 0x22f   :  { %900 = vmatpush.bf16.msrb.mxu2 %v1734_v34  ;;  %913 = vmatpush.bf16.msrb.mxu3 %v1684_v17 }
 0x232   :  { %875 = vmatpush.bf16.msrb.mxu0 %v1717_v28  ;;  %888 = vmatpush.bf16.msrb.mxu1 %v1730_v32 }
 0x233   :  { %901 = vmatpush.bf16.msrb.mxu2 %v1758_v42  ;;  %914 = vmatpush.bf16.msrb.mxu3 %v1732_v33 }
 0x236   :  { %876 = vmatpush.bf16.msrb.mxu0 %v1756_v41  ;;  %889 = vmatpush.bf16.msrb.mxu1 %v1768_v45 }
 0x237   :  { %902 = vmatpush.bf16.msrb.mxu2 %v1794_v54  ;;  %915 = vmatpush.bf16.msrb.mxu3 %v1770_v46 }
 0x23a   :  { %877 = vmatpush.bf16.msrb.mxu0 %v1792_v53  ;;  %890 = vmatpush.bf16.msrb.mxu1 %v1804_v57 }
 0x23b   :  { %903 = vmatpush.bf16.msrb.mxu2 %v1830_v2  ;;  %916 = vmatpush.bf16.msrb.mxu3 %v1806_v58 }
 0x23e   :  { %878 = vmatpush.bf16.msrb.mxu0 %v1828_v1  ;;  %891 = vmatpush.bf16.msrb.mxu1 %v1840_v6 }
 0x23f   :  { %904 = vmatpush.bf16.msrb.mxu2 %v1866_v20  ;;  %917 = vmatpush.bf16.msrb.mxu3 %v1842_v9 }
 0x242   :  { %879 = vmatpush.bf16.msrb.mxu0 %v1864_v19  ;;  %892 = vmatpush.bf16.msrb.mxu1 %v1876_v24 }
 0x243   :  { %905 = vmatpush.bf16.msrb.mxu2 %v1905_v38  ;;  %918 = vmatpush.bf16.msrb.mxu3 %v1878_v25 }
 0x246   :  { %880 = vmatpush.bf16.msrb.mxu0 %v1900_v36  ;;  %893 = vmatpush.bf16.msrb.mxu1 %v1909_v39 }
 0x247   :  { %906 = vmatpush.bf16.msrb.mxu2 %v1923_v48  ;;  %919 = vmatpush.bf16.msrb.mxu3 %v1911_v40 }
 0x2a5   :  { %v624_v59 = vpop.f32.mrf.mxu0  ;;  %v637_v60 = vpop.f32.mrf.mxu1 }
 0x2a6   :  { %v667_v62 = vadd.f32 %v624_v59, %v611_v49  ;;  %v668_v63 = vadd.f32 %v637_v60, %v612_v56 }
 0x2a8   :  { %v1412_v0 = vmul.f32 -1.442695, %v667_v62  ;;  %v1413_v4 = vmul.f32 -1.442695, %v668_v63 }
 0x2aa   :  { %1520 = vpow2.f32 %v1412_v0 }
 0x2ab   :  { %1522 = vpow2.f32 %v1413_v4 }
 0x2ac   :  { %v650_v10 = vpop.f32.mrf.mxu2  ;;  %v663_v11 = vpop.f32.mrf.mxu3 }
 0x2ad   :  { %v670_v13 = vadd.f32 %v663_v11, %v614_v5  ;;  %v626_v14 = vpop.f32.mrf.mxu0  ;;  %v639_v15 = vpop.f32.mrf.mxu1  ;;  %v669_v30 = vadd.f32 %v650_v10, %v613_v37 }
 0x2af   :  { %v1414_v23 = vmul.f32 -1.442695, %v670_v13 }
 0x2b0   :  { %v1521_v22 = vpop.eup %1520 }
 0x2b1   :  { %v1523_v43 = vpop.eup %1522  ;;  %v674_v26 = vadd.f32 1.0, %v1521_v22  ;;  %1524 = vpow2.f32 %v1414_v23 }
 0x2b2   :  { %v693_v47 = vadd.f32 1.0, %v1523_v43 }
 0x2b3   :  { %1526 = vrcp.f32 %v674_v26  ;;  %v686_v56 = vand.u32 2147483648, %v674_v26  ;;  %v684_v62 = vand.u32 2147483647, %v674_v26  ;;  %vm680_vm6 = vweird.f32 %v674_v26 }
 0x2b4   :  { %1528 = vrcp.f32 %v693_v47  ;;  %v652_v44 = vpop.f32.mrf.mxu2  ;;  %v665_v31 = vpop.f32.mrf.mxu3  ;;  %v705_v59 = vand.u32 2147483648, %v693_v47  ;;  %v703_v0 = vand.u32 2147483647, %v693_v47  ;;  %vm699_vm7 = vweird.f32 %v693_v47 }
 0x2b5   :  { %v687_v5 = vor.u32 1.1754944e-38, %v686_v56  ;;  %vm685_vm10 = vcmp.eq.f32.partialorder %v684_v62, 8.507059e+37 }
 0x2b6   :  { %v706_v13 = vor.u32 1.1754944e-38, %v705_v59  ;;  %vm704_vm11 = vcmp.eq.f32.partialorder %v703_v0, 8.507059e+37 }
 0x2b7   :  { %v1525_v50 = vpop.eup %1524 }
 0x2b8   :  { %v713_v51 = vadd.f32 1.0, %v1525_v50 }
 0x2b9   :  { %v1527_v52 = vpop.eup %1526 }
 0x2ba   :  { %v1529_v27 = vpop.eup %1528  ;;  %v676_v35 = vmul.f32 %v1527_v52, %v674_v26  ;;  %1530 = vrcp.f32 %v713_v51  ;;  %vm681_vm4 = vweird.f32 %v1527_v52  ;;  %vm719_vm13 = vweird.f32 %v713_v51 }
 0x2bb   :  { %v695_v55 = vmul.f32 %v1529_v27, %v693_v47  ;;  %1532 = vtanh.f32 %v669_v30  ;;  %vm700_vm5 = vweird.f32 %v1529_v27  ;;  %vm682_vm8 = vmor %vm680_vm6, %vm681_vm4  ;;  %v725_v30 = vand.u32 2147483648, %v713_v51 }
 0x2bc   :  { %v677_v18 = vsub.f32 1.0, %v676_v35  ;;  %vm701_vm9 = vmor %vm699_vm7, %vm700_vm5 }
 0x2bd   :  { %v696_v49 = vsub.f32 1.0, %v695_v55  ;;  %v726_v55 = vor.u32 1.1754944e-38, %v725_v30 }
 0x2be   :  { %v678_v60 = vmul.f32 %v1527_v52, %v677_v18 }
 0x2bf   :  { %v697_v63 = vmul.f32 %v1529_v27, %v696_v49 }
 0x2c0   :  { %v1531_v61 = vpop.eup %1530  ;;  %v679_v4 = vadd.f32 %v1527_v52, %v678_v60 }
 0x2c1   :  { %v698_v10 = vadd.f32 %v1529_v27, %v697_v63  ;;  %v715_v11 = vmul.f32 %v1531_v61, %v713_v51  ;;  %v1533_v15 = vpop.eup %1532  ;;  %vm720_vm12 = vweird.f32 %v1531_v61 }
 0x2c2   :  { %v683_v14 = vsel %vm682_vm8, %v1527_v52, %v679_v4  ;;  %v723_v52 = vand.u32 2147483647, %v713_v51  ;;  %vm721_vm14 = vmor %vm719_vm13, %vm720_vm12 }
 0x2c3   :  { %v688_v23 = vsel %vm685_vm10, %v687_v5, %v683_v14  ;;  %v702_v22 = vsel %vm701_vm9, %v1529_v27, %v698_v10  ;;  %v716_v43 = vsub.f32 1.0, %v715_v11 }
 0x2c4   :  { %v707_v44 = vsel %vm704_vm11, %v706_v13, %v702_v22  ;;  %v730_v31 = vmul.f32 %v1533_v15, %v688_v23  ;;  %vm724_vm15 = vcmp.eq.f32.partialorder %v723_v52, 8.507059e+37 }
 0x2c5   :  { %v729_v37 = vmul.f32 %v707_v44, %v2089_v29  ;;  %v717_v50 = vmul.f32 %v1531_v61, %v716_v43  ;;  %v1416_v29 = vld [vmem:[%s2261_s0 + $0x40] sm:$0xff] }
 0x2c6   :  { %v740_v51 = vunpack.c.l.bf16 %v1416_v29  ;;  %v741_v59 = vunpack.c.h.bf16 %v1416_v29 }
 0x2c7   :  { %v2134_v26 = vadd.f32 %v730_v31, %v729_v37  ;;  %v718_v47 = vadd.f32 %v1531_v61, %v717_v50 }
 0x2c9   :  { %1534 = vtanh.f32 %v2134_v26  ;;  %v722_v35 = vsel %vm721_vm14, %v1531_v61, %v718_v47  ;;  %v1417_v61 = vld [vmem:[%s2261_s0 + $0x48] sm:$0xff] }
 0x2ca   :  { %v727_v18 = vsel %vm724_vm15, %v726_v55, %v722_v35  ;;  %v743_v10 = vunpack.c.h.bf16 %v1417_v61  ;;  %v742_v30 = vunpack.c.l.bf16 %v1417_v61 }
 0x2cf   :  { %v1535_v27 = vpop.eup %1534 }
 0x2d0   :  { %v733_v49 = vmul.f32 %v1535_v27, %v727_v18 }
 0x2d2   :  { %v734_v56 = vpack.c.bf16 %v733_v49, %v733_v49 }
 0x2d4   :  { %1415 = vst [vmem:[%s2263_s4 + $0xc] sm:$0xf] %v734_v56  ;;  %752 = vmatmul.bf16.vlgmr.msra.gmra.mxu0 %v734_v56  ;;  %765 = vmatmul.bf16.vlgmr.msra.gmra.mxu1 %v734_v56 }
 0x2d5   :  { %778 = vmatmul.bf16.vlgmr.msra.gmra.mxu2 %v734_v56  ;;  %791 = vmatmul.bf16.vlgmr.msra.gmra.mxu3 %v734_v56 }
 0x2d6   :  { %1002 = vmatpush.bf16.msra.mxu0 %v1644_v3  ;;  %1015 = vmatpush.bf16.msra.mxu1 %v1655_v7 }
 0x2d7   :  { %1028 = vmatpush.bf16.msra.mxu2 %v1695_v21  ;;  %1041 = vmatpush.bf16.msra.mxu3 %v1657_v8 }
 0x2da   :  { %1003 = vmatpush.bf16.msra.mxu0 %v1669_v12  ;;  %1016 = vmatpush.bf16.msra.mxu1 %v1682_v16 }
 0x2db   :  { %1029 = vmatpush.bf16.msra.mxu2 %v1734_v34  ;;  %1042 = vmatpush.bf16.msra.mxu3 %v1684_v17 }
 0x2de   :  { %1004 = vmatpush.bf16.msra.mxu0 %v1717_v28  ;;  %1017 = vmatpush.bf16.msra.mxu1 %v1730_v32 }
 0x2df   :  { %1030 = vmatpush.bf16.msra.mxu2 %v1758_v42  ;;  %1043 = vmatpush.bf16.msra.mxu3 %v1732_v33 }
 0x2e2   :  { %1005 = vmatpush.bf16.msra.mxu0 %v1756_v41  ;;  %1018 = vmatpush.bf16.msra.mxu1 %v1768_v45 }
 0x2e3   :  { %1031 = vmatpush.bf16.msra.mxu2 %v1794_v54  ;;  %1044 = vmatpush.bf16.msra.mxu3 %v1770_v46 }
 0x2e6   :  { %1006 = vmatpush.bf16.msra.mxu0 %v1792_v53  ;;  %1019 = vmatpush.bf16.msra.mxu1 %v1804_v57 }
 0x2e7   :  { %1032 = vmatpush.bf16.msra.mxu2 %v1830_v2  ;;  %1045 = vmatpush.bf16.msra.mxu3 %v1806_v58 }
 0x2ea   :  { %1007 = vmatpush.bf16.msra.mxu0 %v1828_v1  ;;  %1020 = vmatpush.bf16.msra.mxu1 %v1840_v6 }
 0x2eb   :  { %1033 = vmatpush.bf16.msra.mxu2 %v1866_v20  ;;  %1046 = vmatpush.bf16.msra.mxu3 %v1842_v9 }
 0x2ee   :  { %1008 = vmatpush.bf16.msra.mxu0 %v1864_v19  ;;  %1021 = vmatpush.bf16.msra.mxu1 %v1876_v24 }
 0x2ef   :  { %1034 = vmatpush.bf16.msra.mxu2 %v1905_v38  ;;  %1047 = vmatpush.bf16.msra.mxu3 %v1878_v25 }
 0x2f2   :  { %1009 = vmatpush.bf16.msra.mxu0 %v1900_v36  ;;  %1022 = vmatpush.bf16.msra.mxu1 %v1909_v39 }
 0x2f3   :  { %1035 = vmatpush.bf16.msra.mxu2 %v1923_v48  ;;  %1048 = vmatpush.bf16.msra.mxu3 %v1911_v40 }
 0x351   :  { %v753_v60 = vpop.f32.mrf.mxu0  ;;  %v766_v62 = vpop.f32.mrf.mxu1 }
 0x352   :  { %v796_v63 = vadd.f32 %v753_v60, %v740_v51  ;;  %v797_v0 = vadd.f32 %v766_v62, %v741_v59 }
 0x354   :  { %v1418_v4 = vmul.f32 -1.442695, %v796_v63  ;;  %v1419_v5 = vmul.f32 -1.442695, %v797_v0 }
 0x356   :  { %1536 = vpow2.f32 %v1418_v4 }
 0x357   :  { %1538 = vpow2.f32 %v1419_v5 }
 0x358   :  { %v779_v11 = vpop.f32.mrf.mxu2  ;;  %v792_v13 = vpop.f32.mrf.mxu3 }
 0x359   :  { %v799_v14 = vadd.f32 %v792_v13, %v743_v10  ;;  %v755_v15 = vpop.f32.mrf.mxu0  ;;  %v768_v23 = vpop.f32.mrf.mxu1  ;;  %v798_v27 = vadd.f32 %v779_v11, %v742_v30 }
 0x35b   :  { %v1420_v22 = vmul.f32 -1.442695, %v799_v14 }
 0x35c   :  { %v1537_v43 = vpop.eup %1536 }
 0x35d   :  { %v1539_v44 = vpop.eup %1538  ;;  %v803_v31 = vadd.f32 1.0, %v1537_v43  ;;  %1540 = vpow2.f32 %v1420_v22 }
 0x35e   :  { %v822_v37 = vadd.f32 1.0, %v1539_v44 }
 0x35f   :  { %1542 = vrcp.f32 %v803_v31  ;;  %v815_v59 = vand.u32 2147483648, %v803_v31  ;;  %v813_v63 = vand.u32 2147483647, %v803_v31  ;;  %vm809_vm2 = vweird.f32 %v803_v31 }
 0x360   :  { %1544 = vrcp.f32 %v822_v37  ;;  %v781_v50 = vpop.f32.mrf.mxu2  ;;  %v794_v47 = vpop.f32.mrf.mxu3  ;;  %v834_v60 = vand.u32 2147483648, %v822_v37  ;;  %v832_v4 = vand.u32 2147483647, %v822_v37  ;;  %vm828_vm3 = vweird.f32 %v822_v37 }
 0x361   :  { %v816_v10 = vor.u32 1.1754944e-38, %v815_v59  ;;  %vm814_vm6 = vcmp.eq.f32.partialorder %v813_v63, 8.507059e+37 }
 0x362   :  { %v835_v14 = vor.u32 1.1754944e-38, %v834_v60  ;;  %vm833_vm7 = vcmp.eq.f32.partialorder %v832_v4, 8.507059e+37 }
 0x363   :  { %v1541_v52 = vpop.eup %1540 }
 0x364   :  { %v842_v35 = vadd.f32 1.0, %v1541_v52 }
 0x365   :  { %v1543_v55 = vpop.eup %1542 }
 0x366   :  { %v1545_v18 = vpop.eup %1544  ;;  %v805_v49 = vmul.f32 %v1543_v55, %v803_v31  ;;  %1546 = vrcp.f32 %v842_v35  ;;  %vm810_vm0 = vweird.f32 %v1543_v55  ;;  %vm848_vm9 = vweird.f32 %v842_v35 }
 0x367   :  { %v824_v56 = vmul.f32 %v1545_v18, %v822_v37  ;;  %1548 = vtanh.f32 %v798_v27  ;;  %vm829_vm1 = vweird.f32 %v1545_v18  ;;  %vm811_vm4 = vmor %vm809_vm2, %vm810_vm0  ;;  %v854_v27 = vand.u32 2147483648, %v842_v35 }
 0x368   :  { %v806_v29 = vsub.f32 1.0, %v805_v49  ;;  %vm830_vm5 = vmor %vm828_vm3, %vm829_vm1 }
 0x369   :  { %v825_v51 = vsub.f32 1.0, %v824_v56  ;;  %v855_v56 = vor.u32 1.1754944e-38, %v854_v27 }
 0x36a   :  { %v807_v62 = vmul.f32 %v1543_v55, %v806_v29 }
 0x36b   :  { %v826_v0 = vmul.f32 %v1545_v18, %v825_v51 }
 0x36c   :  { %v1547_v61 = vpop.eup %1546  ;;  %v808_v5 = vadd.f32 %v1543_v55, %v807_v62 }
 0x36d   :  { %v827_v11 = vadd.f32 %v1545_v18, %v826_v0  ;;  %v844_v13 = vmul.f32 %v1547_v61, %v842_v35  ;;  %v1549_v23 = vpop.eup %1548  ;;  %vm849_vm8 = vweird.f32 %v1547_v61 }
 0x36e   :  { %v812_v15 = vsel %vm811_vm4, %v1543_v55, %v808_v5  ;;  %v852_v55 = vand.u32 2147483647, %v842_v35  ;;  %vm850_vm10 = vmor %vm848_vm9, %vm849_vm8 }
 0x36f   :  { %v817_v22 = vsel %vm814_vm6, %v816_v10, %v812_v15  ;;  %v831_v43 = vsel %vm830_vm5, %v1545_v18, %v827_v11  ;;  %v845_v44 = vsub.f32 1.0, %v844_v13 }
 0x370   :  { %v836_v50 = vsel %vm833_vm7, %v835_v14, %v831_v43  ;;  %v859_v47 = vmul.f32 %v1549_v23, %v817_v22  ;;  %vm853_vm11 = vcmp.eq.f32.partialorder %v852_v55, 8.507059e+37 }
 0x371   :  { %v858_v30 = vmul.f32 %v836_v50, %v2134_v26  ;;  %v846_v52 = vmul.f32 %v1547_v61, %v845_v44 }
 0x373   :  { %v2179_v31 = vadd.f32 %v859_v47, %v858_v30  ;;  %v847_v37 = vadd.f32 %v1547_v61, %v846_v52 }
 0x375   :  { %1550 = vtanh.f32 %v2179_v31  ;;  %v851_v49 = vsel %vm850_vm10, %v1547_v61, %v847_v37 }
 0x376   :  { %v856_v29 = vsel %vm853_vm11, %v855_v56, %v851_v49 }
 0x37b   :  { %v1551_v18 = vpop.eup %1550 }
 0x37c   :  { %v862_v51 = vmul.f32 %v1551_v18, %v856_v29 }
 0x37e   :  { %v863_v59 = vpack.c.bf16 %v862_v51, %v862_v51 }
 0x380   :  { %1421 = vst [vmem:[%s2263_s4 + $0x10] sm:$0xf] %v863_v59  ;;  %881 = vmatmul.bf16.vlgmr.msrb.gmra.mxu0 %v863_v59  ;;  %894 = vmatmul.bf16.vlgmr.msrb.gmra.mxu1 %v863_v59 }
 0x381   :  { %907 = vmatmul.bf16.vlgmr.msrb.gmra.mxu2 %v863_v59  ;;  %920 = vmatmul.bf16.vlgmr.msrb.gmra.mxu3 %v863_v59 }
 0x382   :  { %1131 = vmatpush.bf16.msrb.mxu0 %v1644_v3  ;;  %1144 = vmatpush.bf16.msrb.mxu1 %v1655_v7  ;;  %v1422_v3 = vld [vmem:[%s2261_s0 + $0x50] sm:$0xff] }
 0x383   :  { %1157 = vmatpush.bf16.msrb.mxu2 %v1695_v21  ;;  %1170 = vmatpush.bf16.msrb.mxu3 %v1657_v8  ;;  %v869_v7 = vunpack.c.l.bf16 %v1422_v3  ;;  %v870_v8 = vunpack.c.h.bf16 %v1422_v3 }
 0x386   :  { %1132 = vmatpush.bf16.msrb.mxu0 %v1669_v12  ;;  %1145 = vmatpush.bf16.msrb.mxu1 %v1682_v16 }
 0x387   :  { %1158 = vmatpush.bf16.msrb.mxu2 %v1734_v34  ;;  %1171 = vmatpush.bf16.msrb.mxu3 %v1684_v17 }
 0x38a   :  { %1133 = vmatpush.bf16.msrb.mxu0 %v1717_v28  ;;  %1146 = vmatpush.bf16.msrb.mxu1 %v1730_v32  ;;  %v1423_v28 = vld [vmem:[%s2261_s0 + $0x58] sm:$0xff] }
 0x38b   :  { %1159 = vmatpush.bf16.msrb.mxu2 %v1758_v42  ;;  %1172 = vmatpush.bf16.msrb.mxu3 %v1732_v33  ;;  %v872_v34 = vunpack.c.h.bf16 %v1423_v28 }
 0x38e   :  { %1134 = vmatpush.bf16.msrb.mxu0 %v1756_v41  ;;  %1147 = vmatpush.bf16.msrb.mxu1 %v1768_v45 }
 0x38f   :  { %1160 = vmatpush.bf16.msrb.mxu2 %v1794_v54  ;;  %1173 = vmatpush.bf16.msrb.mxu3 %v1770_v46 }
 0x392   :  { %1135 = vmatpush.bf16.msrb.mxu0 %v1792_v53  ;;  %1148 = vmatpush.bf16.msrb.mxu1 %v1804_v57 }
 0x393   :  { %1161 = vmatpush.bf16.msrb.mxu2 %v1830_v2  ;;  %1174 = vmatpush.bf16.msrb.mxu3 %v1806_v58 }
 0x396   :  { %1136 = vmatpush.bf16.msrb.mxu0 %v1828_v1  ;;  %1149 = vmatpush.bf16.msrb.mxu1 %v1840_v6 }
 0x397   :  { %1162 = vmatpush.bf16.msrb.mxu2 %v1866_v20  ;;  %1175 = vmatpush.bf16.msrb.mxu3 %v1842_v9 }
 0x39a   :  { %1137 = vmatpush.bf16.msrb.mxu0 %v1864_v19  ;;  %1150 = vmatpush.bf16.msrb.mxu1 %v1876_v24  ;;  %v871_v19 = vunpack.c.l.bf16 %v1423_v28  ;;  %v1429_v28 = vld [vmem:[%s2261_s0 + $0x68] sm:$0xff] }
 0x39b   :  { %1163 = vmatpush.bf16.msrb.mxu2 %v1905_v38  ;;  %1176 = vmatpush.bf16.msrb.mxu3 %v1878_v25 }
 0x39e   :  { %1138 = vmatpush.bf16.msrb.mxu0 %v1900_v36  ;;  %1151 = vmatpush.bf16.msrb.mxu1 %v1909_v39 }
 0x39f   :  { %1164 = vmatpush.bf16.msrb.mxu2 %v1923_v48  ;;  %1177 = vmatpush.bf16.msrb.mxu3 %v1911_v40 }
 0x3fd   :  { %v882_v12 = vpop.f32.mrf.mxu0  ;;  %v895_v16 = vpop.f32.mrf.mxu1 }
 0x3fe   :  { %v925_v17 = vadd.f32 %v882_v12, %v869_v7  ;;  %v926_v21 = vadd.f32 %v895_v16, %v870_v8 }
 0x400   :  { %v1424_v32 = vmul.f32 -1.442695, %v925_v17  ;;  %v1425_v33 = vmul.f32 -1.442695, %v926_v21 }
 0x402   :  { %1552 = vpow2.f32 %v1424_v32 }
 0x403   :  { %1554 = vpow2.f32 %v1425_v33 }
 0x404   :  { %v908_v41 = vpop.f32.mrf.mxu2  ;;  %v921_v42 = vpop.f32.mrf.mxu3 }
 0x405   :  { %v928_v45 = vadd.f32 %v921_v42, %v872_v34  ;;  %v884_v46 = vpop.f32.mrf.mxu0  ;;  %v897_v53 = vpop.f32.mrf.mxu1  ;;  %v927_v36 = vadd.f32 %v908_v41, %v871_v19  ;;  %v1001_v34 = vunpack.c.h.bf16 %v1429_v28  ;;  %v1000_v19 = vunpack.c.l.bf16 %v1429_v28  ;;  %v1435_v28 = vld [vmem:[%s2261_s0 + $0x78] sm:$0xff] }
 0x407   :  { %v1426_v54 = vmul.f32 -1.442695, %v928_v45 }
 0x408   :  { %v1553_v57 = vpop.eup %1552 }
 0x409   :  { %v1555_v58 = vpop.eup %1554  ;;  %v932_v1 = vadd.f32 1.0, %v1553_v57  ;;  %1556 = vpow2.f32 %v1426_v54 }
 0x40a   :  { %v951_v2 = vadd.f32 1.0, %v1555_v58 }
 0x40b   :  { %1558 = vrcp.f32 %v932_v1  ;;  %v944_v35 = vand.u32 2147483648, %v932_v1  ;;  %v942_v63 = vand.u32 2147483647, %v932_v1  ;;  %vm938_vm14 = vweird.f32 %v932_v1 }
 0x40c   :  { %1560 = vrcp.f32 %v951_v2  ;;  %v910_v6 = vpop.f32.mrf.mxu2  ;;  %v923_v9 = vpop.f32.mrf.mxu3  ;;  %v963_v60 = vand.u32 2147483648, %v951_v2  ;;  %v961_v4 = vand.u32 2147483647, %v951_v2  ;;  %vm957_vm15 = vweird.f32 %v951_v2 }
 0x40d   :  { %v945_v10 = vor.u32 1.1754944e-38, %v944_v35  ;;  %vm943_vm2 = vcmp.eq.f32.partialorder %v942_v63, 8.507059e+37 }
 0x40e   :  { %v964_v14 = vor.u32 1.1754944e-38, %v963_v60  ;;  %vm962_vm3 = vcmp.eq.f32.partialorder %v961_v4, 8.507059e+37 }
 0x40f   :  { %v1557_v20 = vpop.eup %1556 }
 0x410   :  { %v971_v24 = vadd.f32 1.0, %v1557_v20 }
 0x411   :  { %v1559_v25 = vpop.eup %1558 }
 0x412   :  { %v1561_v38 = vpop.eup %1560  ;;  %v934_v39 = vmul.f32 %v1559_v25, %v932_v1  ;;  %1562 = vrcp.f32 %v971_v24  ;;  %vm939_vm12 = vweird.f32 %v1559_v25  ;;  %v983_v55 = vand.u32 2147483648, %v971_v24 }
 0x413   :  { %v953_v40 = vmul.f32 %v1561_v38, %v951_v2  ;;  %1564 = vtanh.f32 %v927_v36  ;;  %vm958_vm13 = vweird.f32 %v1561_v38  ;;  %vm940_vm0 = vmor %vm938_vm14, %vm939_vm12  ;;  %vm977_vm5 = vweird.f32 %v971_v24 }
 0x414   :  { %v935_v48 = vsub.f32 1.0, %v934_v39  ;;  %vm959_vm1 = vmor %vm957_vm15, %vm958_vm13  ;;  %v981_v49 = vand.u32 2147483647, %v971_v24  ;;  %v984_v18 = vor.u32 1.1754944e-38, %v983_v55 }
 0x415   :  { %v954_v26 = vsub.f32 1.0, %v953_v40 }
 0x416   :  { %v936_v62 = vmul.f32 %v1559_v25, %v935_v48  ;;  %vm982_vm7 = vcmp.eq.f32.partialorder %v981_v49, 8.507059e+37 }
 0x417   :  { %v955_v0 = vmul.f32 %v1561_v38, %v954_v26 }
 0x418   :  { %v1563_v61 = vpop.eup %1562  ;;  %v937_v5 = vadd.f32 %v1559_v25, %v936_v62 }
 0x419   :  { %v956_v11 = vadd.f32 %v1561_v38, %v955_v0  ;;  %v973_v13 = vmul.f32 %v1563_v61, %v971_v24  ;;  %v1565_v23 = vpop.eup %1564  ;;  %vm978_vm4 = vweird.f32 %v1563_v61 }
 0x41a   :  { %v941_v15 = vsel %vm940_vm0, %v1559_v25, %v937_v5  ;;  %vm979_vm6 = vmor %vm977_vm5, %vm978_vm4 }
 0x41b   :  { %v946_v22 = vsel %vm943_vm2, %v945_v10, %v941_v15  ;;  %v960_v43 = vsel %vm959_vm1, %v1561_v38, %v956_v11  ;;  %v974_v44 = vsub.f32 1.0, %v973_v13 }
 0x41c   :  { %v965_v50 = vsel %vm962_vm3, %v964_v14, %v960_v43  ;;  %v988_v47 = vmul.f32 %v1565_v23, %v946_v22 }
 0x41d   :  { %v987_v30 = vmul.f32 %v965_v50, %v2179_v31  ;;  %v975_v52 = vmul.f32 %v1563_v61, %v974_v44  ;;  %v1428_v31 = vld [vmem:[%s2261_s0 + $0x60] sm:$0xff] }
 0x41e   :  { %v998_v7 = vunpack.c.l.bf16 %v1428_v31  ;;  %v999_v8 = vunpack.c.h.bf16 %v1428_v31 }
 0x41f   :  { %v2224_v37 = vadd.f32 %v988_v47, %v987_v30  ;;  %v976_v27 = vadd.f32 %v1563_v61, %v975_v52 }
 0x421   :  { %1566 = vtanh.f32 %v2224_v37  ;;  %v980_v56 = vsel %vm979_vm6, %v1563_v61, %v976_v27 }
 0x422   :  { %v985_v51 = vsel %vm982_vm7, %v984_v18, %v980_v56 }
 0x427   :  { %v1567_v29 = vpop.eup %1566 }
 0x428   :  { %v991_v59 = vmul.f32 %v1567_v29, %v985_v51 }
 0x42a   :  { %v992_v3 = vpack.c.bf16 %v991_v59, %v991_v59 }
 0x42c   :  { %1427 = vst [vmem:[%s2263_s4 + $0x14] sm:$0xf] %v992_v3  ;;  %1010 = vmatmul.bf16.vlgmr.msra.gmra.mxu0 %v992_v3  ;;  %1023 = vmatmul.bf16.vlgmr.msra.gmra.mxu1 %v992_v3 }
 0x42d   :  { %1036 = vmatmul.bf16.vlgmr.msra.gmra.mxu2 %v992_v3  ;;  %1049 = vmatmul.bf16.vlgmr.msra.gmra.mxu3 %v992_v3 }
 0x4a9   :  { %v1011_v12 = vpop.f32.mrf.mxu0  ;;  %v1024_v16 = vpop.f32.mrf.mxu1 }
 0x4aa   :  { %v1054_v17 = vadd.f32 %v1011_v12, %v998_v7  ;;  %v1055_v21 = vadd.f32 %v1024_v16, %v999_v8 }
 0x4ac   :  { %v1430_v32 = vmul.f32 -1.442695, %v1054_v17  ;;  %v1431_v33 = vmul.f32 -1.442695, %v1055_v21 }
 0x4ae   :  { %1568 = vpow2.f32 %v1430_v32 }
 0x4af   :  { %1570 = vpow2.f32 %v1431_v33 }
 0x4b0   :  { %v1037_v41 = vpop.f32.mrf.mxu2  ;;  %v1050_v42 = vpop.f32.mrf.mxu3 }
 0x4b1   :  { %v1057_v45 = vadd.f32 %v1050_v42, %v1001_v34  ;;  %v1013_v46 = vpop.f32.mrf.mxu0  ;;  %v1026_v53 = vpop.f32.mrf.mxu1  ;;  %v1056_v36 = vadd.f32 %v1037_v41, %v1000_v19  ;;  %v1130_v34 = vunpack.c.h.bf16 %v1435_v28  ;;  %v1129_v19 = vunpack.c.l.bf16 %v1435_v28 }
 0x4b3   :  { %v1432_v54 = vmul.f32 -1.442695, %v1057_v45 }
 0x4b4   :  { %v1569_v57 = vpop.eup %1568 }
 0x4b5   :  { %v1571_v58 = vpop.eup %1570  ;;  %v1061_v1 = vadd.f32 1.0, %v1569_v57  ;;  %1572 = vpow2.f32 %v1432_v54 }
 0x4b6   :  { %v1080_v2 = vadd.f32 1.0, %v1571_v58 }
 0x4b7   :  { %1574 = vrcp.f32 %v1061_v1  ;;  %v1073_v35 = vand.u32 2147483648, %v1061_v1  ;;  %v1071_v63 = vand.u32 2147483647, %v1061_v1  ;;  %vm1067_vm10 = vweird.f32 %v1061_v1 }
 0x4b8   :  { %1576 = vrcp.f32 %v1080_v2  ;;  %v1039_v6 = vpop.f32.mrf.mxu2  ;;  %v1052_v9 = vpop.f32.mrf.mxu3  ;;  %v1092_v60 = vand.u32 2147483648, %v1080_v2  ;;  %v1090_v4 = vand.u32 2147483647, %v1080_v2  ;;  %vm1086_vm11 = vweird.f32 %v1080_v2 }
 0x4b9   :  { %v1074_v10 = vor.u32 1.1754944e-38, %v1073_v35  ;;  %vm1072_vm14 = vcmp.eq.f32.partialorder %v1071_v63, 8.507059e+37 }
 0x4ba   :  { %v1093_v14 = vor.u32 1.1754944e-38, %v1092_v60  ;;  %vm1091_vm15 = vcmp.eq.f32.partialorder %v1090_v4, 8.507059e+37 }
 0x4bb   :  { %v1573_v20 = vpop.eup %1572 }
 0x4bc   :  { %v1100_v24 = vadd.f32 1.0, %v1573_v20 }
 0x4bd   :  { %v1575_v25 = vpop.eup %1574 }
 0x4be   :  { %v1577_v38 = vpop.eup %1576  ;;  %v1063_v39 = vmul.f32 %v1575_v25, %v1061_v1  ;;  %1578 = vrcp.f32 %v1100_v24  ;;  %vm1068_vm8 = vweird.f32 %v1575_v25  ;;  %v1112_v49 = vand.u32 2147483648, %v1100_v24 }
 0x4bf   :  { %v1082_v40 = vmul.f32 %v1577_v38, %v1080_v2  ;;  %1580 = vtanh.f32 %v1056_v36  ;;  %vm1087_vm9 = vweird.f32 %v1577_v38  ;;  %vm1069_vm12 = vmor %vm1067_vm10, %vm1068_vm8  ;;  %vm1106_vm1 = vweird.f32 %v1100_v24 }
 0x4c0   :  { %v1064_v48 = vsub.f32 1.0, %v1063_v39  ;;  %vm1088_vm13 = vmor %vm1086_vm11, %vm1087_vm9  ;;  %v1110_v56 = vand.u32 2147483647, %v1100_v24  ;;  %v1113_v29 = vor.u32 1.1754944e-38, %v1112_v49 }
 0x4c1   :  { %v1083_v26 = vsub.f32 1.0, %v1082_v40 }
 0x4c2   :  { %v1065_v62 = vmul.f32 %v1575_v25, %v1064_v48  ;;  %vm1111_vm3 = vcmp.eq.f32.partialorder %v1110_v56, 8.507059e+37 }
 0x4c3   :  { %v1084_v0 = vmul.f32 %v1577_v38, %v1083_v26 }
 0x4c4   :  { %v1579_v61 = vpop.eup %1578  ;;  %v1066_v5 = vadd.f32 %v1575_v25, %v1065_v62 }
 0x4c5   :  { %v1085_v11 = vadd.f32 %v1577_v38, %v1084_v0  ;;  %v1102_v13 = vmul.f32 %v1579_v61, %v1100_v24  ;;  %v1581_v23 = vpop.eup %1580  ;;  %vm1107_vm0 = vweird.f32 %v1579_v61 }
 0x4c6   :  { %v1070_v15 = vsel %vm1069_vm12, %v1575_v25, %v1066_v5  ;;  %vm1108_vm2 = vmor %vm1106_vm1, %vm1107_vm0 }
 0x4c7   :  { %v1075_v22 = vsel %vm1072_vm14, %v1074_v10, %v1070_v15  ;;  %v1089_v43 = vsel %vm1088_vm13, %v1577_v38, %v1085_v11  ;;  %v1103_v44 = vsub.f32 1.0, %v1102_v13 }
 0x4c8   :  { %v1094_v50 = vsel %vm1091_vm15, %v1093_v14, %v1089_v43  ;;  %v1117_v47 = vmul.f32 %v1581_v23, %v1075_v22 }
 0x4c9   :  { %v1116_v30 = vmul.f32 %v1094_v50, %v2224_v37  ;;  %v1104_v52 = vmul.f32 %v1579_v61, %v1103_v44  ;;  %v1434_v37 = vld [vmem:[%s2261_s0 + $0x70] sm:$0xff] }
 0x4ca   :  { %v1127_v7 = vunpack.c.l.bf16 %v1434_v37  ;;  %v1128_v8 = vunpack.c.h.bf16 %v1434_v37 }
 0x4cb   :  { %v2237_v27 = vadd.f32 %v1117_v47, %v1116_v30  ;;  %v1105_v55 = vadd.f32 %v1579_v61, %v1104_v52 }
 0x4cd   :  { %1582 = vtanh.f32 %v2237_v27  ;;  %v1109_v18 = vsel %vm1108_vm2, %v1579_v61, %v1105_v55 }
 0x4ce   :  { %v1114_v59 = vsel %vm1111_vm3, %v1113_v29, %v1109_v18 }
 0x4d3   :  { %v1583_v51 = vpop.eup %1582 }
 0x4d4   :  { %v1120_v3 = vmul.f32 %v1583_v51, %v1114_v59 }
 0x4d6   :  { %v1121_v31 = vpack.c.bf16 %v1120_v3, %v1120_v3 }
 0x4d8   :  { %1433 = vst [vmem:[%s2263_s4 + $0x18] sm:$0xf] %v1121_v31  ;;  %1139 = vmatmul.bf16.vlgmr.msrb.gmra.mxu0 %v1121_v31  ;;  %1152 = vmatmul.bf16.vlgmr.msrb.gmra.mxu1 %v1121_v31 }
 0x4d9   :  { %1165 = vmatmul.bf16.vlgmr.msrb.gmra.mxu2 %v1121_v31  ;;  %1178 = vmatmul.bf16.vlgmr.msrb.gmra.mxu3 %v1121_v31 }
 0x555   :  { %v1140_v12 = vpop.f32.mrf.mxu0  ;;  %v1153_v16 = vpop.f32.mrf.mxu1 }
 0x556   :  { %v1183_v17 = vadd.f32 %v1140_v12, %v1127_v7  ;;  %v1184_v21 = vadd.f32 %v1153_v16, %v1128_v8 }
 0x558   :  { %v1436_v32 = vmul.f32 -1.442695, %v1183_v17  ;;  %v1437_v33 = vmul.f32 -1.442695, %v1184_v21 }
 0x55a   :  { %1584 = vpow2.f32 %v1436_v32 }
 0x55b   :  { %1586 = vpow2.f32 %v1437_v33 }
 0x55c   :  { %v1166_v41 = vpop.f32.mrf.mxu2  ;;  %v1179_v42 = vpop.f32.mrf.mxu3 }
 0x55d   :  { %v1186_v45 = vadd.f32 %v1179_v42, %v1130_v34  ;;  %v1142_v46 = vpop.f32.mrf.mxu0  ;;  %v1155_v53 = vpop.f32.mrf.mxu1  ;;  %v1185_v36 = vadd.f32 %v1166_v41, %v1129_v19 }
 0x55f   :  { %v1438_v54 = vmul.f32 -1.442695, %v1186_v45 }
 0x560   :  { %v1585_v57 = vpop.eup %1584 }
 0x561   :  { %v1587_v58 = vpop.eup %1586  ;;  %v1190_v1 = vadd.f32 1.0, %v1585_v57  ;;  %1588 = vpow2.f32 %v1438_v54 }
 0x562   :  { %v1209_v2 = vadd.f32 1.0, %v1587_v58 }
 0x563   :  { %1590 = vrcp.f32 %v1190_v1  ;;  %v1202_v35 = vand.u32 2147483648, %v1190_v1  ;;  %v1200_v63 = vand.u32 2147483647, %v1190_v1  ;;  %vm1196_vm6 = vweird.f32 %v1190_v1 }
 0x564   :  { %1592 = vrcp.f32 %v1209_v2  ;;  %v1168_v6 = vpop.f32.mrf.mxu2  ;;  %v1181_v9 = vpop.f32.mrf.mxu3  ;;  %v1221_v60 = vand.u32 2147483648, %v1209_v2  ;;  %v1219_v4 = vand.u32 2147483647, %v1209_v2  ;;  %vm1215_vm7 = vweird.f32 %v1209_v2 }
 0x565   :  { %v1203_v10 = vor.u32 1.1754944e-38, %v1202_v35  ;;  %vm1201_vm10 = vcmp.eq.f32.partialorder %v1200_v63, 8.507059e+37 }
 0x566   :  { %v1222_v14 = vor.u32 1.1754944e-38, %v1221_v60  ;;  %vm1220_vm11 = vcmp.eq.f32.partialorder %v1219_v4, 8.507059e+37 }
 0x567   :  { %v1589_v20 = vpop.eup %1588 }
 0x568   :  { %v1229_v24 = vadd.f32 1.0, %v1589_v20 }
 0x569   :  { %v1591_v25 = vpop.eup %1590 }
 0x56a   :  { %v1593_v38 = vpop.eup %1592  ;;  %v1192_v39 = vmul.f32 %v1591_v25, %v1190_v1  ;;  %1594 = vrcp.f32 %v1229_v24  ;;  %vm1197_vm4 = vweird.f32 %v1591_v25  ;;  %v1241_v56 = vand.u32 2147483648, %v1229_v24 }
 0x56b   :  { %v1211_v40 = vmul.f32 %v1593_v38, %v1209_v2  ;;  %1596 = vtanh.f32 %v1185_v36  ;;  %vm1216_vm5 = vweird.f32 %v1593_v38  ;;  %vm1198_vm8 = vmor %vm1196_vm6, %vm1197_vm4  ;;  %vm1235_vm13 = vweird.f32 %v1229_v24 }
 0x56c   :  { %v1193_v48 = vsub.f32 1.0, %v1192_v39  ;;  %vm1217_vm9 = vmor %vm1215_vm7, %vm1216_vm5  ;;  %v1239_v18 = vand.u32 2147483647, %v1229_v24  ;;  %v1242_v51 = vor.u32 1.1754944e-38, %v1241_v56 }
 0x56d   :  { %v1212_v26 = vsub.f32 1.0, %v1211_v40 }
 0x56e   :  { %v1194_v62 = vmul.f32 %v1591_v25, %v1193_v48  ;;  %vm1240_vm15 = vcmp.eq.f32.partialorder %v1239_v18, 8.507059e+37 }
 0x56f   :  { %v1213_v0 = vmul.f32 %v1593_v38, %v1212_v26 }
 0x570   :  { %v1595_v61 = vpop.eup %1594  ;;  %v1195_v5 = vadd.f32 %v1591_v25, %v1194_v62 }
 0x571   :  { %v1214_v11 = vadd.f32 %v1593_v38, %v1213_v0  ;;  %v1231_v13 = vmul.f32 %v1595_v61, %v1229_v24  ;;  %v1597_v23 = vpop.eup %1596  ;;  %vm1236_vm12 = vweird.f32 %v1595_v61 }
 0x572   :  { %v1199_v15 = vsel %vm1198_vm8, %v1591_v25, %v1195_v5  ;;  %vm1237_vm14 = vmor %vm1235_vm13, %vm1236_vm12 }
 0x573   :  { %v1204_v22 = vsel %vm1201_vm10, %v1203_v10, %v1199_v15  ;;  %v1218_v43 = vsel %vm1217_vm9, %v1593_v38, %v1214_v11  ;;  %v1232_v44 = vsub.f32 1.0, %v1231_v13 }
 0x574   :  { %v1223_v50 = vsel %vm1220_vm11, %v1222_v14, %v1218_v43  ;;  %v1246_v47 = vmul.f32 %v1597_v23, %v1204_v22 }
 0x575   :  { %v1245_v30 = vmul.f32 %v1223_v50, %v2237_v27  ;;  %v1233_v52 = vmul.f32 %v1595_v61, %v1232_v44 }
 0x577   :  { %v1247_v55 = vadd.f32 %v1246_v47, %v1245_v30  ;;  %v1234_v49 = vadd.f32 %v1595_v61, %v1233_v52 }
 0x579   :  { %1598 = vtanh.f32 %v1247_v55  ;;  %1254 = vst [vmem:[%s2264_s6] sm:$0xff] %v1247_v55  ;;  %v1238_v29 = vsel %vm1237_vm14, %v1595_v61, %v1234_v49 }
 0x57a   :  { %v1243_v3 = vsel %vm1240_vm15, %v1242_v51, %v1238_v29 }
 0x57f   :  { %v1599_v59 = vpop.eup %1598 }
 0x580   :  { %v1249_v31 = vmul.f32 %v1599_v59, %v1243_v3 }
 0x582   :  { %v1250_v27 = vpack.c.bf16 %v1249_v31, %v1249_v31  ;;  %1253 = vst [vmem:[%s2265_s5] sm:$0xff] %v1249_v31 }
 0x584   :  { %1439 = vst [vmem:[%s2263_s4 + $0x1c] sm:$0xf] %v1250_v27 }

</bundles_post_ra>
